<compile_context>
chip_gen: v7x
topology: tpu7x:2x2x1
jax: 0.10.0
libtpu: 0.0.40
codegen_flags: <defaults>
</compile_context>

<pallas_src>
import jax
import jax.numpy as jnp
from jax.experimental import pallas as pl
from jax.experimental.pallas import tpu as pltpu


def _dcgru_seq_kernel(adj_ref, gx_ru_ref, gx_c_ref, h0_ref,
                      wh_ru_ref, wh_c_ref, out_ref):
    """Entire DCGRU recurrence over T steps in one invocation (no grid)."""
    f32 = jnp.float32
    mdt = adj_ref.dtype                    # MXU operand dtype (bf16 or f32)
    hp = h0_ref.shape[-1]                  # lane-dense padded hidden size (128)
    t_steps = out_ref.shape[0]

    adj = adj_ref[...]                     # (N, N)        mdt, resident
    wh_ru = wh_ru_ref[...]                 # (Hp, 2*Hp)    mdt, resident
    wh_c = wh_c_ref[...]                   # (Hp, Hp)      mdt, resident

    def step(t, h):                        # h: (N, Hp) f32 carried state
        gx_ru = gx_ru_ref[t]               # (N, 2*Hp) f32 -- x path precomputed in wrapper
        gx_c = gx_c_ref[t]                 # (N, Hp)   f32

        ah = jnp.dot(adj, h.astype(mdt), preferred_element_type=f32)           # (N, Hp)
        z = jnp.dot(ah.astype(mdt), wh_ru, preferred_element_type=f32) + gx_ru  # (N, 2*Hp)
        r = jax.nn.sigmoid(z[:, :hp])      # vreg-aligned 128-lane slices
        u = jax.nn.sigmoid(z[:, hp:])

        arh = jnp.dot(adj, (r * h).astype(mdt), preferred_element_type=f32)     # (N, Hp)
        c = jnp.tanh(jnp.dot(arh.astype(mdt), wh_c, preferred_element_type=f32) + gx_c)

        h_new = u * h + (1.0 - u) * c      # padded lanes of h and c are 0 => stays 0
        out_ref[t] = h_new
        return h_new

    jax.lax.fori_loop(0, t_steps, step, h0_ref[...], unroll=True)


def dcgru_sequence(adj_hat, x_seq, h0, params, *, mxu_dtype=jnp.bfloat16):
    """Run the DCGRU cell over a sequence of inputs in a single fused kernel.

    adj_hat : (N, N)        normalized adjacency
    x_seq   : (T, N, F_in)  per-timestep node features
    h0      : (N, H)        initial hidden state
    returns : (T, N, H)     per-timestep states (outputs == states; final state = [-1])
    """
    t_steps, n, _ = x_seq.shape
    hidden = h0.shape[-1]
    hp = ((hidden + 127) // 128) * 128     # lane-dense padded hidden size
    f32 = jnp.float32

    wx_ru, wh_ru, b_ru, wx_c, wh_c, b_c = params

    # ---- x-dependent path, hoisted off the serial recurrence (plain JAX, f32) ----
    ax_seq = jnp.einsum('nm,tmf->tnf', adj_hat, x_seq)                 # (T, N, F)
    gx_r = ax_seq @ wx_ru[:, :hidden] + b_ru[:hidden]                  # (T, N, H)
    gx_u = ax_seq @ wx_ru[:, hidden:] + b_ru[hidden:]                  # (T, N, H)
    gx_c = ax_seq @ wx_c + b_c                                         # (T, N, H)

    # lane-dense packing: r block in lanes [0, hp), u block in lanes [hp, 2*hp)
    gx_ru_p = jnp.zeros((t_steps, n, 2 * hp), f32)
    gx_ru_p = gx_ru_p.at[..., :hidden].set(gx_r).at[..., hp:hp + hidden].set(gx_u)
    gx_c_p = jnp.zeros((t_steps, n, hp), f32).at[..., :hidden].set(gx_c)

    # recurrent weights, zero-padded so padded h / c lanes stay exactly zero
    wh_ru_p = jnp.zeros((hp, 2 * hp), f32)
    wh_ru_p = wh_ru_p.at[:hidden, :hidden].set(wh_ru[:, :hidden])
    wh_ru_p = wh_ru_p.at[:hidden, hp:hp + hidden].set(wh_ru[:, hidden:])
    wh_c_p = jnp.zeros((hp, hp), f32).at[:hidden, :hidden].set(wh_c)
    h0_p = jnp.pad(h0.astype(f32), ((0, 0), (0, hp - hidden)))          # (N, Hp)

    vmem = pl.BlockSpec(memory_space=pltpu.MemorySpace.VMEM)            # whole-array, resident

    out = pl.pallas_call(
        _dcgru_seq_kernel,
        out_shape=jax.ShapeDtypeStruct((t_steps, n, hp), f32),
        in_specs=[vmem] * 6,
        out_specs=vmem,
    )(adj_hat.astype(mxu_dtype), gx_ru_p, gx_c_p, h0_p,
      wh_ru_p.astype(mxu_dtype), wh_c_p.astype(mxu_dtype))

    return out[:, :, :hidden]


def dcgru_cell(adj_hat, inputs, states, params, *, mxu_dtype=jnp.bfloat16):
    """Single DCGRUCell.forward: returns (outputs, new_state), both (N, H)."""
    out_seq = dcgru_sequence(adj_hat, inputs[None], states, params, mxu_dtype=mxu_dtype)
    new_state = out_seq[0]
    return new_state, new_state


def _cell_reference(adj_hat, x, h, params):
    """Plain-JAX reference mirroring the PyTorch DCGRUCell forward exactly (f32)."""
    wx_ru, wh_ru, b_ru, wx_c, wh_c, b_c = params
    hidden = h.shape[-1]
    w_ru = jnp.concatenate([wx_ru, wh_ru], axis=0)
    w_c = jnp.concatenate([wx_c, wh_c], axis=0)
    ru = jax.nn.sigmoid(adj_hat @ jnp.concatenate([x, h], -1) @ w_ru + b_ru)
    r, u = ru[:, :hidden], ru[:, hidden:]
    c = jnp.tanh(adj_hat @ jnp.concatenate([x, r * h], -1) @ w_c + b_c)
    return u * h + (1.0 - u) * c


def _init_params(key, f_in, hidden):
    """Deterministic xavier-uniform weights, zero biases (dgl GraphConv default init)."""
    def xavier(k, shape):
        fan_in, fan_out = shape
        bound = (6.0 / (fan_in + fan_out)) ** 0.5
        return jax.random.uniform(k, shape, jnp.float32, -bound, bound)

    k1, k2, k3, k4 = jax.random.split(key, 4)
    wx_ru = xavier(k1, (f_in, 2 * hidden))
    wh_ru = xavier(k2, (hidden, 2 * hidden))
    b_ru = jnp.zeros((2 * hidden,), jnp.float32)
    wx_c = xavier(k3, (f_in, hidden))
    wh_c = xavier(k4, (hidden, hidden))
    b_c = jnp.zeros((hidden,), jnp.float32)
    return (wx_ru, wh_ru, b_ru, wx_c, wh_c, b_c)


def _make_graph(key, n):
    """Deterministic random graph -> symmetrically normalized adjacency with self-loops."""
    a = (jax.random.uniform(key, (n, n)) < 0.3).astype(jnp.float32)
    a = jnp.maximum(a, a.T)
    a = a + jnp.eye(n, dtype=jnp.float32)
    a = jnp.minimum(a, 1.0)
    deg = jnp.sum(a, axis=1)
    d_inv_sqrt = 1.0 / jnp.sqrt(deg)
    return a * d_inv_sqrt[:, None] * d_inv_sqrt[None, :]


if __name__ == "__main__":
    N_NODES = 16       # graph nodes
    INPUT_SIZE = 4     # per-node input features
    HIDDEN_SIZE = 32   # DCGRU hidden size
    SEQ_LEN = 8        # timesteps fused into one kernel

    key = jax.random.PRNGKey(0)
    k_graph, k_x, k_h, k_params = jax.random.split(key, 4)

    adj_hat = _make_graph(k_graph, N_NODES)                                        # (16, 16)
    x_seq = jax.random.normal(k_x, (SEQ_LEN, N_NODES, INPUT_SIZE), jnp.float32)    # (8, 16, 4)
    h0 = jax.random.normal(k_h, (N_NODES, HIDDEN_SIZE), jnp.float32)               # (16, 32)
    params = _init_params(k_params, INPUT_SIZE, HIDDEN_SIZE)

    # sequential pure-JAX reference (exact PyTorch-module semantics, f32)
    h = h0
    refs = []
    for t in range(SEQ_LEN):
        h = _cell_reference(adj_hat, x_seq[t], h, params)
        refs.append(h)
    ref_seq = jnp.stack(refs)

    # --- f32-MXU path: validates kernel structure bit-for-bit (up to summation order) ---
    out_f32 = jax.block_until_ready(
        dcgru_sequence(adj_hat, x_seq, h0, params, mxu_dtype=jnp.float32))
    assert out_f32.shape == (SEQ_LEN, N_NODES, HIDDEN_SIZE)
    assert jnp.allclose(out_f32, ref_seq, atol=1e-4, rtol=1e-4), "f32 sequence mismatch vs reference"

    # --- bf16-MXU path (perf default): tolerance deliberately loosened for bf16 operands ---
    out_bf16 = jax.block_until_ready(dcgru_sequence(adj_hat, x_seq, h0, params))
    assert out_bf16.shape == (SEQ_LEN, N_NODES, HIDDEN_SIZE)
    assert jnp.allclose(out_bf16, ref_seq, atol=1e-1, rtol=1e-1), "bf16 sequence mismatch vs reference"
    assert float(jnp.mean(jnp.abs(out_bf16 - ref_seq))) < 5e-2, "bf16 mean error too large"

    # --- single-step call matching the module's forward signature (f32 path, tight check) ---
    outputs, new_state = dcgru_cell(adj_hat, x_seq[0], h0, params, mxu_dtype=jnp.float32)
    outputs = jax.block_until_ready(outputs)
    ref0 = _cell_reference(adj_hat, x_seq[0], h0, params)
    assert outputs.shape == (N_NODES, HIDDEN_SIZE)
    assert jnp.allclose(outputs, ref0, atol=1e-4, rtol=1e-4), "single-step mismatch vs reference"
    assert jnp.allclose(new_state, ref0, atol=1e-4, rtol=1e-4), "state mismatch vs reference"

    print("KERNEL_OK")
</pallas_src>

<mosaic_0001>
module attributes {stable_mosaic.version = 11 : i64} {
  func.func @_dcgru_seq_kernel(%arg0: memref<16x16xf32, #tpu.memory_space<vmem>>, %arg1: memref<8x16x256xf32, #tpu.memory_space<vmem>>, %arg2: memref<8x16x128xf32, #tpu.memory_space<vmem>>, %arg3: memref<16x128xf32, #tpu.memory_space<vmem>>, %arg4: memref<128x256xf32, #tpu.memory_space<vmem>>, %arg5: memref<128x128xf32, #tpu.memory_space<vmem>>, %arg6: memref<8x16x128xf32, #tpu.memory_space<vmem>>) attributes {dimension_semantics = [], scalar_prefetch = 0 : i64, scratch_operands = 0 : i64, tpu.core_type = #tpu.core_type<tc>} {
    %c0 = arith.constant 0 : index
    %c0_0 = arith.constant 0 : index
    %0 = vector.load %arg0[%c0, %c0_0] : memref<16x16xf32, #tpu.memory_space<vmem>>, vector<16x16xf32>
    %c0_1 = arith.constant 0 : index
    %c0_2 = arith.constant 0 : index
    %1 = vector.load %arg4[%c0_1, %c0_2] : memref<128x256xf32, #tpu.memory_space<vmem>>, vector<128x256xf32>
    %c0_3 = arith.constant 0 : index
    %c0_4 = arith.constant 0 : index
    %2 = vector.load %arg5[%c0_3, %c0_4] : memref<128x128xf32, #tpu.memory_space<vmem>>, vector<128x128xf32>
    %c0_5 = arith.constant 0 : index
    %c0_6 = arith.constant 0 : index
    %3 = vector.load %arg3[%c0_5, %c0_6] : memref<16x128xf32, #tpu.memory_space<vmem>>, vector<16x128xf32>
    %c0_i32 = arith.constant 0 : i32
    %4 = arith.index_cast %c0_i32 : i32 to index
    %c0_7 = arith.constant 0 : index
    %c0_8 = arith.constant 0 : index
    %5 = vector.load %arg1[%4, %c0_7, %c0_8] : memref<8x16x256xf32, #tpu.memory_space<vmem>>, vector<1x16x256xf32>
    %6 = vector.shape_cast %5 : vector<1x16x256xf32> to vector<16x256xf32>
    %7 = arith.index_cast %c0_i32 : i32 to index
    %c0_9 = arith.constant 0 : index
    %c0_10 = arith.constant 0 : index
    %8 = vector.load %arg2[%7, %c0_9, %c0_10] : memref<8x16x128xf32, #tpu.memory_space<vmem>>, vector<1x16x128xf32>
    %9 = vector.shape_cast %8 : vector<1x16x128xf32> to vector<16x128xf32>
    %cst = arith.constant dense<0.000000e+00> : vector<16x128xf32>
    %10 = tpu.matmul %0, %3, %cst {dimension_numbers = #tpu.dot_dimension_numbers<[1], [0], [0], [1], [0, 0, 1, 1], [], []>} : vector<16x16xf32>, vector<16x128xf32>, vector<16x128xf32> -> vector<16x128xf32>
    %cst_11 = arith.constant dense<0.000000e+00> : vector<16x256xf32>
    %11 = tpu.matmul %10, %1, %cst_11 {dimension_numbers = #tpu.dot_dimension_numbers<[1], [0], [0], [1], [0, 0, 1, 1], [], []>} : vector<16x128xf32>, vector<128x256xf32>, vector<16x256xf32> -> vector<16x256xf32>
    %12 = arith.addf %11, %6 : vector<16x256xf32>
    %13 = vector.extract_strided_slice %12 {offsets = [0, 0], sizes = [16, 128], strides = [1, 1]} : vector<16x256xf32> to vector<16x128xf32>
    %14 = arith.negf %13 : vector<16x128xf32>
    %15 = math.exp %14 : vector<16x128xf32>
    %cst_12 = arith.constant 1.000000e+00 : f32
    %16 = vector.broadcast %cst_12 : f32 to vector<16x128xf32>
    %17 = arith.addf %16, %15 : vector<16x128xf32>
    %18 = arith.divf %16, %17 : vector<16x128xf32>
    %19 = vector.extract_strided_slice %12 {offsets = [0, 128], sizes = [16, 128], strides = [1, 1]} : vector<16x256xf32> to vector<16x128xf32>
    %20 = arith.negf %19 : vector<16x128xf32>
    %21 = math.exp %20 : vector<16x128xf32>
    %cst_13 = arith.constant 1.000000e+00 : f32
    %22 = vector.broadcast %cst_13 : f32 to vector<16x128xf32>
    %23 = arith.addf %22, %21 : vector<16x128xf32>
    %24 = arith.divf %22, %23 : vector<16x128xf32>
    %25 = arith.mulf %18, %3 : vector<16x128xf32>
    %cst_14 = arith.constant dense<0.000000e+00> : vector<16x128xf32>
    %26 = tpu.matmul %0, %25, %cst_14 {dimension_numbers = #tpu.dot_dimension_numbers<[1], [0], [0], [1], [0, 0, 1, 1], [], []>} : vector<16x16xf32>, vector<16x128xf32>, vector<16x128xf32> -> vector<16x128xf32>
    %cst_15 = arith.constant dense<0.000000e+00> : vector<16x128xf32>
    %27 = tpu.matmul %26, %2, %cst_15 {dimension_numbers = #tpu.dot_dimension_numbers<[1], [0], [0], [1], [0, 0, 1, 1], [], []>} : vector<16x128xf32>, vector<128x128xf32>, vector<16x128xf32> -> vector<16x128xf32>
    %28 = arith.addf %27, %9 : vector<16x128xf32>
    %29 = math.tanh %28 : vector<16x128xf32>
    %30 = arith.mulf %24, %3 : vector<16x128xf32>
    %cst_16 = arith.constant 1.000000e+00 : f32
    %31 = vector.broadcast %cst_16 : f32 to vector<16x128xf32>
    %32 = arith.subf %31, %24 : vector<16x128xf32>
    %33 = arith.mulf %32, %29 : vector<16x128xf32>
    %34 = arith.addf %30, %33 : vector<16x128xf32>
    %35 = arith.index_cast %c0_i32 : i32 to index
    %c0_17 = arith.constant 0 : index
    %c0_18 = arith.constant 0 : index
    %36 = vector.load %arg6[%35, %c0_17, %c0_18] : memref<8x16x128xf32, #tpu.memory_space<vmem>>, vector<1x16x128xf32>
    %37 = vector.shape_cast %36 : vector<1x16x128xf32> to vector<16x128xf32>
    %38 = vector.shape_cast %34 : vector<16x128xf32> to vector<1x16x128xf32>
    tpu.vector_store %arg6[%35, %c0_17, %c0_18], %38 {strides = array<i32>} : memref<8x16x128xf32, #tpu.memory_space<vmem>>, vector<1x16x128xf32>,
    %c1_i32 = arith.constant 1 : i32
    %39 = arith.index_cast %c1_i32 : i32 to index
    %c0_19 = arith.constant 0 : index
    %c0_20 = arith.constant 0 : index
    %40 = vector.load %arg1[%39, %c0_19, %c0_20] : memref<8x16x256xf32, #tpu.memory_space<vmem>>, vector<1x16x256xf32>
    %41 = vector.shape_cast %40 : vector<1x16x256xf32> to vector<16x256xf32>
    %42 = arith.index_cast %c1_i32 : i32 to index
    %c0_21 = arith.constant 0 : index
    %c0_22 = arith.constant 0 : index
    %43 = vector.load %arg2[%42, %c0_21, %c0_22] : memref<8x16x128xf32, #tpu.memory_space<vmem>>, vector<1x16x128xf32>
    %44 = vector.shape_cast %43 : vector<1x16x128xf32> to vector<16x128xf32>
    %cst_23 = arith.constant dense<0.000000e+00> : vector<16x128xf32>
    %45 = tpu.matmul %0, %34, %cst_23 {dimension_numbers = #tpu.dot_dimension_numbers<[1], [0], [0], [1], [0, 0, 1, 1], [], []>} : vector<16x16xf32>, vector<16x128xf32>, vector<16x128xf32> -> vector<16x128xf32>
    %cst_24 = arith.constant dense<0.000000e+00> : vector<16x256xf32>
    %46 = tpu.matmul %45, %1, %cst_24 {dimension_numbers = #tpu.dot_dimension_numbers<[1], [0], [0], [1], [0, 0, 1, 1], [], []>} : vector<16x128xf32>, vector<128x256xf32>, vector<16x256xf32> -> vector<16x256xf32>
    %47 = arith.addf %46, %41 : vector<16x256xf32>
    %48 = vector.extract_strided_slice %47 {offsets = [0, 0], sizes = [16, 128], strides = [1, 1]} : vector<16x256xf32> to vector<16x128xf32>
    %49 = arith.negf %48 : vector<16x128xf32>
    %50 = math.exp %49 : vector<16x128xf32>
    %cst_25 = arith.constant 1.000000e+00 : f32
    %51 = vector.broadcast %cst_25 : f32 to vector<16x128xf32>
    %52 = arith.addf %51, %50 : vector<16x128xf32>
    %53 = arith.divf %51, %52 : vector<16x128xf32>
    %54 = vector.extract_strided_slice %47 {offsets = [0, 128], sizes = [16, 128], strides = [1, 1]} : vector<16x256xf32> to vector<16x128xf32>
    %55 = arith.negf %54 : vector<16x128xf32>
    %56 = math.exp %55 : vector<16x128xf32>
    %cst_26 = arith.constant 1.000000e+00 : f32
    %57 = vector.broadcast %cst_26 : f32 to vector<16x128xf32>
    %58 = arith.addf %57, %56 : vector<16x128xf32>
    %59 = arith.divf %57, %58 : vector<16x128xf32>
    %60 = arith.mulf %53, %34 : vector<16x128xf32>
    %cst_27 = arith.constant dense<0.000000e+00> : vector<16x128xf32>
    %61 = tpu.matmul %0, %60, %cst_27 {dimension_numbers = #tpu.dot_dimension_numbers<[1], [0], [0], [1], [0, 0, 1, 1], [], []>} : vector<16x16xf32>, vector<16x128xf32>, vector<16x128xf32> -> vector<16x128xf32>
    %cst_28 = arith.constant dense<0.000000e+00> : vector<16x128xf32>
    %62 = tpu.matmul %61, %2, %cst_28 {dimension_numbers = #tpu.dot_dimension_numbers<[1], [0], [0], [1], [0, 0, 1, 1], [], []>} : vector<16x128xf32>, vector<128x128xf32>, vector<16x128xf32> -> vector<16x128xf32>
    %63 = arith.addf %62, %44 : vector<16x128xf32>
    %64 = math.tanh %63 : vector<16x128xf32>
    %65 = arith.mulf %59, %34 : vector<16x128xf32>
    %cst_29 = arith.constant 1.000000e+00 : f32
    %66 = vector.broadcast %cst_29 : f32 to vector<16x128xf32>
    %67 = arith.subf %66, %59 : vector<16x128xf32>
    %68 = arith.mulf %67, %64 : vector<16x128xf32>
    %69 = arith.addf %65, %68 : vector<16x128xf32>
    %70 = arith.index_cast %c1_i32 : i32 to index
    %c0_30 = arith.constant 0 : index
    %c0_31 = arith.constant 0 : index
    %71 = vector.load %arg6[%70, %c0_30, %c0_31] : memref<8x16x128xf32, #tpu.memory_space<vmem>>, vector<1x16x128xf32>
    %72 = vector.shape_cast %71 : vector<1x16x128xf32> to vector<16x128xf32>
    %73 = vector.shape_cast %69 : vector<16x128xf32> to vector<1x16x128xf32>
    tpu.vector_store %arg6[%70, %c0_30, %c0_31], %73 {strides = array<i32>} : memref<8x16x128xf32, #tpu.memory_space<vmem>>, vector<1x16x128xf32>,
    %c2_i32 = arith.constant 2 : i32
    %74 = arith.index_cast %c2_i32 : i32 to index
    %c0_32 = arith.constant 0 : index
    %c0_33 = arith.constant 0 : index
    %75 = vector.load %arg1[%74, %c0_32, %c0_33] : memref<8x16x256xf32, #tpu.memory_space<vmem>>, vector<1x16x256xf32>
    %76 = vector.shape_cast %75 : vector<1x16x256xf32> to vector<16x256xf32>
    %77 = arith.index_cast %c2_i32 : i32 to index
    %c0_34 = arith.constant 0 : index
    %c0_35 = arith.constant 0 : index
    %78 = vector.load %arg2[%77, %c0_34, %c0_35] : memref<8x16x128xf32, #tpu.memory_space<vmem>>, vector<1x16x128xf32>
    %79 = vector.shape_cast %78 : vector<1x16x128xf32> to vector<16x128xf32>
    %cst_36 = arith.constant dense<0.000000e+00> : vector<16x128xf32>
    %80 = tpu.matmul %0, %69, %cst_36 {dimension_numbers = #tpu.dot_dimension_numbers<[1], [0], [0], [1], [0, 0, 1, 1], [], []>} : vector<16x16xf32>, vector<16x128xf32>, vector<16x128xf32> -> vector<16x128xf32>
    %cst_37 = arith.constant dense<0.000000e+00> : vector<16x256xf32>
    %81 = tpu.matmul %80, %1, %cst_37 {dimension_numbers = #tpu.dot_dimension_numbers<[1], [0], [0], [1], [0, 0, 1, 1], [], []>} : vector<16x128xf32>, vector<128x256xf32>, vector<16x256xf32> -> vector<16x256xf32>
    %82 = arith.addf %81, %76 : vector<16x256xf32>
    %83 = vector.extract_strided_slice %82 {offsets = [0, 0], sizes = [16, 128], strides = [1, 1]} : vector<16x256xf32> to vector<16x128xf32>
    %84 = arith.negf %83 : vector<16x128xf32>
    %85 = math.exp %84 : vector<16x128xf32>
    %cst_38 = arith.constant 1.000000e+00 : f32
    %86 = vector.broadcast %cst_38 : f32 to vector<16x128xf32>
    %87 = arith.addf %86, %85 : vector<16x128xf32>
    %88 = arith.divf %86, %87 : vector<16x128xf32>
    %89 = vector.extract_strided_slice %82 {offsets = [0, 128], sizes = [16, 128], strides = [1, 1]} : vector<16x256xf32> to vector<16x128xf32>
    %90 = arith.negf %89 : vector<16x128xf32>
    %91 = math.exp %90 : vector<16x128xf32>
    %cst_39 = arith.constant 1.000000e+00 : f32
    %92 = vector.broadcast %cst_39 : f32 to vector<16x128xf32>
    %93 = arith.addf %92, %91 : vector<16x128xf32>
    %94 = arith.divf %92, %93 : vector<16x128xf32>
    %95 = arith.mulf %88, %69 : vector<16x128xf32>
    %cst_40 = arith.constant dense<0.000000e+00> : vector<16x128xf32>
    %96 = tpu.matmul %0, %95, %cst_40 {dimension_numbers = #tpu.dot_dimension_numbers<[1], [0], [0], [1], [0, 0, 1, 1], [], []>} : vector<16x16xf32>, vector<16x128xf32>, vector<16x128xf32> -> vector<16x128xf32>
    %cst_41 = arith.constant dense<0.000000e+00> : vector<16x128xf32>
    %97 = tpu.matmul %96, %2, %cst_41 {dimension_numbers = #tpu.dot_dimension_numbers<[1], [0], [0], [1], [0, 0, 1, 1], [], []>} : vector<16x128xf32>, vector<128x128xf32>, vector<16x128xf32> -> vector<16x128xf32>
    %98 = arith.addf %97, %79 : vector<16x128xf32>
    %99 = math.tanh %98 : vector<16x128xf32>
    %100 = arith.mulf %94, %69 : vector<16x128xf32>
    %cst_42 = arith.constant 1.000000e+00 : f32
    %101 = vector.broadcast %cst_42 : f32 to vector<16x128xf32>
    %102 = arith.subf %101, %94 : vector<16x128xf32>
    %103 = arith.mulf %102, %99 : vector<16x128xf32>
    %104 = arith.addf %100, %103 : vector<16x128xf32>
    %105 = arith.index_cast %c2_i32 : i32 to index
    %c0_43 = arith.constant 0 : index
    %c0_44 = arith.constant 0 : index
    %106 = vector.load %arg6[%105, %c0_43, %c0_44] : memref<8x16x128xf32, #tpu.memory_space<vmem>>, vector<1x16x128xf32>
    %107 = vector.shape_cast %106 : vector<1x16x128xf32> to vector<16x128xf32>
    %108 = vector.shape_cast %104 : vector<16x128xf32> to vector<1x16x128xf32>
    tpu.vector_store %arg6[%105, %c0_43, %c0_44], %108 {strides = array<i32>} : memref<8x16x128xf32, #tpu.memory_space<vmem>>, vector<1x16x128xf32>,
    %c3_i32 = arith.constant 3 : i32
    %109 = arith.index_cast %c3_i32 : i32 to index
    %c0_45 = arith.constant 0 : index
    %c0_46 = arith.constant 0 : index
    %110 = vector.load %arg1[%109, %c0_45, %c0_46] : memref<8x16x256xf32, #tpu.memory_space<vmem>>, vector<1x16x256xf32>
    %111 = vector.shape_cast %110 : vector<1x16x256xf32> to vector<16x256xf32>
    %112 = arith.index_cast %c3_i32 : i32 to index
    %c0_47 = arith.constant 0 : index
    %c0_48 = arith.constant 0 : index
    %113 = vector.load %arg2[%112, %c0_47, %c0_48] : memref<8x16x128xf32, #tpu.memory_space<vmem>>, vector<1x16x128xf32>
    %114 = vector.shape_cast %113 : vector<1x16x128xf32> to vector<16x128xf32>
    %cst_49 = arith.constant dense<0.000000e+00> : vector<16x128xf32>
    %115 = tpu.matmul %0, %104, %cst_49 {dimension_numbers = #tpu.dot_dimension_numbers<[1], [0], [0], [1], [0, 0, 1, 1], [], []>} : vector<16x16xf32>, vector<16x128xf32>, vector<16x128xf32> -> vector<16x128xf32>
    %cst_50 = arith.constant dense<0.000000e+00> : vector<16x256xf32>
    %116 = tpu.matmul %115, %1, %cst_50 {dimension_numbers = #tpu.dot_dimension_numbers<[1], [0], [0], [1], [0, 0, 1, 1], [], []>} : vector<16x128xf32>, vector<128x256xf32>, vector<16x256xf32> -> vector<16x256xf32>
    %117 = arith.addf %116, %111 : vector<16x256xf32>
    %118 = vector.extract_strided_slice %117 {offsets = [0, 0], sizes = [16, 128], strides = [1, 1]} : vector<16x256xf32> to vector<16x128xf32>
    %119 = arith.negf %118 : vector<16x128xf32>
    %120 = math.exp %119 : vector<16x128xf32>
    %cst_51 = arith.constant 1.000000e+00 : f32
    %121 = vector.broadcast %cst_51 : f32 to vector<16x128xf32>
    %122 = arith.addf %121, %120 : vector<16x128xf32>
    %123 = arith.divf %121, %122 : vector<16x128xf32>
    %124 = vector.extract_strided_slice %117 {offsets = [0, 128], sizes = [16, 128], strides = [1, 1]} : vector<16x256xf32> to vector<16x128xf32>
    %125 = arith.negf %124 : vector<16x128xf32>
    %126 = math.exp %125 : vector<16x128xf32>
    %cst_52 = arith.constant 1.000000e+00 : f32
    %127 = vector.broadcast %cst_52 : f32 to vector<16x128xf32>
    %128 = arith.addf %127, %126 : vector<16x128xf32>
    %129 = arith.divf %127, %128 : vector<16x128xf32>
    %130 = arith.mulf %123, %104 : vector<16x128xf32>
    %cst_53 = arith.constant dense<0.000000e+00> : vector<16x128xf32>
    %131 = tpu.matmul %0, %130, %cst_53 {dimension_numbers = #tpu.dot_dimension_numbers<[1], [0], [0], [1], [0, 0, 1, 1], [], []>} : vector<16x16xf32>, vector<16x128xf32>, vector<16x128xf32> -> vector<16x128xf32>
    %cst_54 = arith.constant dense<0.000000e+00> : vector<16x128xf32>
    %132 = tpu.matmul %131, %2, %cst_54 {dimension_numbers = #tpu.dot_dimension_numbers<[1], [0], [0], [1], [0, 0, 1, 1], [], []>} : vector<16x128xf32>, vector<128x128xf32>, vector<16x128xf32> -> vector<16x128xf32>
    %133 = arith.addf %132, %114 : vector<16x128xf32>
    %134 = math.tanh %133 : vector<16x128xf32>
    %135 = arith.mulf %129, %104 : vector<16x128xf32>
    %cst_55 = arith.constant 1.000000e+00 : f32
    %136 = vector.broadcast %cst_55 : f32 to vector<16x128xf32>
    %137 = arith.subf %136, %129 : vector<16x128xf32>
    %138 = arith.mulf %137, %134 : vector<16x128xf32>
    %139 = arith.addf %135, %138 : vector<16x128xf32>
    %140 = arith.index_cast %c3_i32 : i32 to index
    %c0_56 = arith.constant 0 : index
    %c0_57 = arith.constant 0 : index
    %141 = vector.load %arg6[%140, %c0_56, %c0_57] : memref<8x16x128xf32, #tpu.memory_space<vmem>>, vector<1x16x128xf32>
    %142 = vector.shape_cast %141 : vector<1x16x128xf32> to vector<16x128xf32>
    %143 = vector.shape_cast %139 : vector<16x128xf32> to vector<1x16x128xf32>
    tpu.vector_store %arg6[%140, %c0_56, %c0_57], %143 {strides = array<i32>} : memref<8x16x128xf32, #tpu.memory_space<vmem>>, vector<1x16x128xf32>,
    %c4_i32 = arith.constant 4 : i32
    %144 = arith.index_cast %c4_i32 : i32 to index
    %c0_58 = arith.constant 0 : index
    %c0_59 = arith.constant 0 : index
    %145 = vector.load %arg1[%144, %c0_58, %c0_59] : memref<8x16x256xf32, #tpu.memory_space<vmem>>, vector<1x16x256xf32>
    %146 = vector.shape_cast %145 : vector<1x16x256xf32> to vector<16x256xf32>
    %147 = arith.index_cast %c4_i32 : i32 to index
    %c0_60 = arith.constant 0 : index
    %c0_61 = arith.constant 0 : index
    %148 = vector.load %arg2[%147, %c0_60, %c0_61] : memref<8x16x128xf32, #tpu.memory_space<vmem>>, vector<1x16x128xf32>
    %149 = vector.shape_cast %148 : vector<1x16x128xf32> to vector<16x128xf32>
    %cst_62 = arith.constant dense<0.000000e+00> : vector<16x128xf32>
    %150 = tpu.matmul %0, %139, %cst_62 {dimension_numbers = #tpu.dot_dimension_numbers<[1], [0], [0], [1], [0, 0, 1, 1], [], []>} : vector<16x16xf32>, vector<16x128xf32>, vector<16x128xf32> -> vector<16x128xf32>
    %cst_63 = arith.constant dense<0.000000e+00> : vector<16x256xf32>
    %151 = tpu.matmul %150, %1, %cst_63 {dimension_numbers = #tpu.dot_dimension_numbers<[1], [0], [0], [1], [0, 0, 1, 1], [], []>} : vector<16x128xf32>, vector<128x256xf32>, vector<16x256xf32> -> vector<16x256xf32>
    %152 = arith.addf %151, %146 : vector<16x256xf32>
    %153 = vector.extract_strided_slice %152 {offsets = [0, 0], sizes = [16, 128], strides = [1, 1]} : vector<16x256xf32> to vector<16x128xf32>
    %154 = arith.negf %153 : vector<16x128xf32>
    %155 = math.exp %154 : vector<16x128xf32>
    %cst_64 = arith.constant 1.000000e+00 : f32
    %156 = vector.broadcast %cst_64 : f32 to vector<16x128xf32>
    %157 = arith.addf %156, %155 : vector<16x128xf32>
    %158 = arith.divf %156, %157 : vector<16x128xf32>
    %159 = vector.extract_strided_slice %152 {offsets = [0, 128], sizes = [16, 128], strides = [1, 1]} : vector<16x256xf32> to vector<16x128xf32>
    %160 = arith.negf %159 : vector<16x128xf32>
    %161 = math.exp %160 : vector<16x128xf32>
    %cst_65 = arith.constant 1.000000e+00 : f32
    %162 = vector.broadcast %cst_65 : f32 to vector<16x128xf32>
    %163 = arith.addf %162, %161 : vector<16x128xf32>
    %164 = arith.divf %162, %163 : vector<16x128xf32>
    %165 = arith.mulf %158, %139 : vector<16x128xf32>
    %cst_66 = arith.constant dense<0.000000e+00> : vector<16x128xf32>
    %166 = tpu.matmul %0, %165, %cst_66 {dimension_numbers = #tpu.dot_dimension_numbers<[1], [0], [0], [1], [0, 0, 1, 1], [], []>} : vector<16x16xf32>, vector<16x128xf32>, vector<16x128xf32> -> vector<16x128xf32>
    %cst_67 = arith.constant dense<0.000000e+00> : vector<16x128xf32>
    %167 = tpu.matmul %166, %2, %cst_67 {dimension_numbers = #tpu.dot_dimension_numbers<[1], [0], [0], [1], [0, 0, 1, 1], [], []>} : vector<16x128xf32>, vector<128x128xf32>, vector<16x128xf32> -> vector<16x128xf32>
    %168 = arith.addf %167, %149 : vector<16x128xf32>
    %169 = math.tanh %168 : vector<16x128xf32>
    %170 = arith.mulf %164, %139 : vector<16x128xf32>
    %cst_68 = arith.constant 1.000000e+00 : f32
    %171 = vector.broadcast %cst_68 : f32 to vector<16x128xf32>
    %172 = arith.subf %171, %164 : vector<16x128xf32>
    %173 = arith.mulf %172, %169 : vector<16x128xf32>
    %174 = arith.addf %170, %173 : vector<16x128xf32>
    %175 = arith.index_cast %c4_i32 : i32 to index
    %c0_69 = arith.constant 0 : index
    %c0_70 = arith.constant 0 : index
    %176 = vector.load %arg6[%175, %c0_69, %c0_70] : memref<8x16x128xf32, #tpu.memory_space<vmem>>, vector<1x16x128xf32>
    %177 = vector.shape_cast %176 : vector<1x16x128xf32> to vector<16x128xf32>
    %178 = vector.shape_cast %174 : vector<16x128xf32> to vector<1x16x128xf32>
    tpu.vector_store %arg6[%175, %c0_69, %c0_70], %178 {strides = array<i32>} : memref<8x16x128xf32, #tpu.memory_space<vmem>>, vector<1x16x128xf32>,
    %c5_i32 = arith.constant 5 : i32
    %179 = arith.index_cast %c5_i32 : i32 to index
    %c0_71 = arith.constant 0 : index
    %c0_72 = arith.constant 0 : index
    %180 = vector.load %arg1[%179, %c0_71, %c0_72] : memref<8x16x256xf32, #tpu.memory_space<vmem>>, vector<1x16x256xf32>
    %181 = vector.shape_cast %180 : vector<1x16x256xf32> to vector<16x256xf32>
    %182 = arith.index_cast %c5_i32 : i32 to index
    %c0_73 = arith.constant 0 : index
    %c0_74 = arith.constant 0 : index
    %183 = vector.load %arg2[%182, %c0_73, %c0_74] : memref<8x16x128xf32, #tpu.memory_space<vmem>>, vector<1x16x128xf32>
    %184 = vector.shape_cast %183 : vector<1x16x128xf32> to vector<16x128xf32>
    %cst_75 = arith.constant dense<0.000000e+00> : vector<16x128xf32>
    %185 = tpu.matmul %0, %174, %cst_75 {dimension_numbers = #tpu.dot_dimension_numbers<[1], [0], [0], [1], [0, 0, 1, 1], [], []>} : vector<16x16xf32>, vector<16x128xf32>, vector<16x128xf32> -> vector<16x128xf32>
    %cst_76 = arith.constant dense<0.000000e+00> : vector<16x256xf32>
    %186 = tpu.matmul %185, %1, %cst_76 {dimension_numbers = #tpu.dot_dimension_numbers<[1], [0], [0], [1], [0, 0, 1, 1], [], []>} : vector<16x128xf32>, vector<128x256xf32>, vector<16x256xf32> -> vector<16x256xf32>
    %187 = arith.addf %186, %181 : vector<16x256xf32>
    %188 = vector.extract_strided_slice %187 {offsets = [0, 0], sizes = [16, 128], strides = [1, 1]} : vector<16x256xf32> to vector<16x128xf32>
    %189 = arith.negf %188 : vector<16x128xf32>
    %190 = math.exp %189 : vector<16x128xf32>
    %cst_77 = arith.constant 1.000000e+00 : f32
    %191 = vector.broadcast %cst_77 : f32 to vector<16x128xf32>
    %192 = arith.addf %191, %190 : vector<16x128xf32>
    %193 = arith.divf %191, %192 : vector<16x128xf32>
    %194 = vector.extract_strided_slice %187 {offsets = [0, 128], sizes = [16, 128], strides = [1, 1]} : vector<16x256xf32> to vector<16x128xf32>
    %195 = arith.negf %194 : vector<16x128xf32>
    %196 = math.exp %195 : vector<16x128xf32>
    %cst_78 = arith.constant 1.000000e+00 : f32
    %197 = vector.broadcast %cst_78 : f32 to vector<16x128xf32>
    %198 = arith.addf %197, %196 : vector<16x128xf32>
    %199 = arith.divf %197, %198 : vector<16x128xf32>
    %200 = arith.mulf %193, %174 : vector<16x128xf32>
    %cst_79 = arith.constant dense<0.000000e+00> : vector<16x128xf32>
    %201 = tpu.matmul %0, %200, %cst_79 {dimension_numbers = #tpu.dot_dimension_numbers<[1], [0], [0], [1], [0, 0, 1, 1], [], []>} : vector<16x16xf32>, vector<16x128xf32>, vector<16x128xf32> -> vector<16x128xf32>
    %cst_80 = arith.constant dense<0.000000e+00> : vector<16x128xf32>
    %202 = tpu.matmul %201, %2, %cst_80 {dimension_numbers = #tpu.dot_dimension_numbers<[1], [0], [0], [1], [0, 0, 1, 1], [], []>} : vector<16x128xf32>, vector<128x128xf32>, vector<16x128xf32> -> vector<16x128xf32>
    %203 = arith.addf %202, %184 : vector<16x128xf32>
    %204 = math.tanh %203 : vector<16x128xf32>
    %205 = arith.mulf %199, %174 : vector<16x128xf32>
    %cst_81 = arith.constant 1.000000e+00 : f32
    %206 = vector.broadcast %cst_81 : f32 to vector<16x128xf32>
    %207 = arith.subf %206, %199 : vector<16x128xf32>
    %208 = arith.mulf %207, %204 : vector<16x128xf32>
    %209 = arith.addf %205, %208 : vector<16x128xf32>
    %210 = arith.index_cast %c5_i32 : i32 to index
    %c0_82 = arith.constant 0 : index
    %c0_83 = arith.constant 0 : index
    %211 = vector.load %arg6[%210, %c0_82, %c0_83] : memref<8x16x128xf32, #tpu.memory_space<vmem>>, vector<1x16x128xf32>
    %212 = vector.shape_cast %211 : vector<1x16x128xf32> to vector<16x128xf32>
    %213 = vector.shape_cast %209 : vector<16x128xf32> to vector<1x16x128xf32>
    tpu.vector_store %arg6[%210, %c0_82, %c0_83], %213 {strides = array<i32>} : memref<8x16x128xf32, #tpu.memory_space<vmem>>, vector<1x16x128xf32>,
    %c6_i32 = arith.constant 6 : i32
    %214 = arith.index_cast %c6_i32 : i32 to index
    %c0_84 = arith.constant 0 : index
    %c0_85 = arith.constant 0 : index
    %215 = vector.load %arg1[%214, %c0_84, %c0_85] : memref<8x16x256xf32, #tpu.memory_space<vmem>>, vector<1x16x256xf32>
    %216 = vector.shape_cast %215 : vector<1x16x256xf32> to vector<16x256xf32>
    %217 = arith.index_cast %c6_i32 : i32 to index
    %c0_86 = arith.constant 0 : index
    %c0_87 = arith.constant 0 : index
    %218 = vector.load %arg2[%217, %c0_86, %c0_87] : memref<8x16x128xf32, #tpu.memory_space<vmem>>, vector<1x16x128xf32>
    %219 = vector.shape_cast %218 : vector<1x16x128xf32> to vector<16x128xf32>
    %cst_88 = arith.constant dense<0.000000e+00> : vector<16x128xf32>
    %220 = tpu.matmul %0, %209, %cst_88 {dimension_numbers = #tpu.dot_dimension_numbers<[1], [0], [0], [1], [0, 0, 1, 1], [], []>} : vector<16x16xf32>, vector<16x128xf32>, vector<16x128xf32> -> vector<16x128xf32>
    %cst_89 = arith.constant dense<0.000000e+00> : vector<16x256xf32>
    %221 = tpu.matmul %220, %1, %cst_89 {dimension_numbers = #tpu.dot_dimension_numbers<[1], [0], [0], [1], [0, 0, 1, 1], [], []>} : vector<16x128xf32>, vector<128x256xf32>, vector<16x256xf32> -> vector<16x256xf32>
    %222 = arith.addf %221, %216 : vector<16x256xf32>
    %223 = vector.extract_strided_slice %222 {offsets = [0, 0], sizes = [16, 128], strides = [1, 1]} : vector<16x256xf32> to vector<16x128xf32>
    %224 = arith.negf %223 : vector<16x128xf32>
    %225 = math.exp %224 : vector<16x128xf32>
    %cst_90 = arith.constant 1.000000e+00 : f32
    %226 = vector.broadcast %cst_90 : f32 to vector<16x128xf32>
    %227 = arith.addf %226, %225 : vector<16x128xf32>
    %228 = arith.divf %226, %227 : vector<16x128xf32>
    %229 = vector.extract_strided_slice %222 {offsets = [0, 128], sizes = [16, 128], strides = [1, 1]} : vector<16x256xf32> to vector<16x128xf32>
    %230 = arith.negf %229 : vector<16x128xf32>
    %231 = math.exp %230 : vector<16x128xf32>
    %cst_91 = arith.constant 1.000000e+00 : f32
    %232 = vector.broadcast %cst_91 : f32 to vector<16x128xf32>
    %233 = arith.addf %232, %231 : vector<16x128xf32>
    %234 = arith.divf %232, %233 : vector<16x128xf32>
    %235 = arith.mulf %228, %209 : vector<16x128xf32>
    %cst_92 = arith.constant dense<0.000000e+00> : vector<16x128xf32>
    %236 = tpu.matmul %0, %235, %cst_92 {dimension_numbers = #tpu.dot_dimension_numbers<[1], [0], [0], [1], [0, 0, 1, 1], [], []>} : vector<16x16xf32>, vector<16x128xf32>, vector<16x128xf32> -> vector<16x128xf32>
    %cst_93 = arith.constant dense<0.000000e+00> : vector<16x128xf32>
    %237 = tpu.matmul %236, %2, %cst_93 {dimension_numbers = #tpu.dot_dimension_numbers<[1], [0], [0], [1], [0, 0, 1, 1], [], []>} : vector<16x128xf32>, vector<128x128xf32>, vector<16x128xf32> -> vector<16x128xf32>
    %238 = arith.addf %237, %219 : vector<16x128xf32>
    %239 = math.tanh %238 : vector<16x128xf32>
    %240 = arith.mulf %234, %209 : vector<16x128xf32>
    %cst_94 = arith.constant 1.000000e+00 : f32
    %241 = vector.broadcast %cst_94 : f32 to vector<16x128xf32>
    %242 = arith.subf %241, %234 : vector<16x128xf32>
    %243 = arith.mulf %242, %239 : vector<16x128xf32>
    %244 = arith.addf %240, %243 : vector<16x128xf32>
    %245 = arith.index_cast %c6_i32 : i32 to index
    %c0_95 = arith.constant 0 : index
    %c0_96 = arith.constant 0 : index
    %246 = vector.load %arg6[%245, %c0_95, %c0_96] : memref<8x16x128xf32, #tpu.memory_space<vmem>>, vector<1x16x128xf32>
    %247 = vector.shape_cast %246 : vector<1x16x128xf32> to vector<16x128xf32>
    %248 = vector.shape_cast %244 : vector<16x128xf32> to vector<1x16x128xf32>
    tpu.vector_store %arg6[%245, %c0_95, %c0_96], %248 {strides = array<i32>} : memref<8x16x128xf32, #tpu.memory_space<vmem>>, vector<1x16x128xf32>,
    %c7_i32 = arith.constant 7 : i32
    %249 = arith.index_cast %c7_i32 : i32 to index
    %c0_97 = arith.constant 0 : index
    %c0_98 = arith.constant 0 : index
    %250 = vector.load %arg1[%249, %c0_97, %c0_98] : memref<8x16x256xf32, #tpu.memory_space<vmem>>, vector<1x16x256xf32>
    %251 = vector.shape_cast %250 : vector<1x16x256xf32> to vector<16x256xf32>
    %252 = arith.index_cast %c7_i32 : i32 to index
    %c0_99 = arith.constant 0 : index
    %c0_100 = arith.constant 0 : index
    %253 = vector.load %arg2[%252, %c0_99, %c0_100] : memref<8x16x128xf32, #tpu.memory_space<vmem>>, vector<1x16x128xf32>
    %254 = vector.shape_cast %253 : vector<1x16x128xf32> to vector<16x128xf32>
    %cst_101 = arith.constant dense<0.000000e+00> : vector<16x128xf32>
    %255 = tpu.matmul %0, %244, %cst_101 {dimension_numbers = #tpu.dot_dimension_numbers<[1], [0], [0], [1], [0, 0, 1, 1], [], []>} : vector<16x16xf32>, vector<16x128xf32>, vector<16x128xf32> -> vector<16x128xf32>
    %cst_102 = arith.constant dense<0.000000e+00> : vector<16x256xf32>
    %256 = tpu.matmul %255, %1, %cst_102 {dimension_numbers = #tpu.dot_dimension_numbers<[1], [0], [0], [1], [0, 0, 1, 1], [], []>} : vector<16x128xf32>, vector<128x256xf32>, vector<16x256xf32> -> vector<16x256xf32>
    %257 = arith.addf %256, %251 : vector<16x256xf32>
    %258 = vector.extract_strided_slice %257 {offsets = [0, 0], sizes = [16, 128], strides = [1, 1]} : vector<16x256xf32> to vector<16x128xf32>
    %259 = arith.negf %258 : vector<16x128xf32>
    %260 = math.exp %259 : vector<16x128xf32>
    %cst_103 = arith.constant 1.000000e+00 : f32
    %261 = vector.broadcast %cst_103 : f32 to vector<16x128xf32>
    %262 = arith.addf %261, %260 : vector<16x128xf32>
    %263 = arith.divf %261, %262 : vector<16x128xf32>
    %264 = vector.extract_strided_slice %257 {offsets = [0, 128], sizes = [16, 128], strides = [1, 1]} : vector<16x256xf32> to vector<16x128xf32>
    %265 = arith.negf %264 : vector<16x128xf32>
    %266 = math.exp %265 : vector<16x128xf32>
    %cst_104 = arith.constant 1.000000e+00 : f32
    %267 = vector.broadcast %cst_104 : f32 to vector<16x128xf32>
    %268 = arith.addf %267, %266 : vector<16x128xf32>
    %269 = arith.divf %267, %268 : vector<16x128xf32>
    %270 = arith.mulf %263, %244 : vector<16x128xf32>
    %cst_105 = arith.constant dense<0.000000e+00> : vector<16x128xf32>
    %271 = tpu.matmul %0, %270, %cst_105 {dimension_numbers = #tpu.dot_dimension_numbers<[1], [0], [0], [1], [0, 0, 1, 1], [], []>} : vector<16x16xf32>, vector<16x128xf32>, vector<16x128xf32> -> vector<16x128xf32>
    %cst_106 = arith.constant dense<0.000000e+00> : vector<16x128xf32>
    %272 = tpu.matmul %271, %2, %cst_106 {dimension_numbers = #tpu.dot_dimension_numbers<[1], [0], [0], [1], [0, 0, 1, 1], [], []>} : vector<16x128xf32>, vector<128x128xf32>, vector<16x128xf32> -> vector<16x128xf32>
    %273 = arith.addf %272, %254 : vector<16x128xf32>
    %274 = math.tanh %273 : vector<16x128xf32>
    %275 = arith.mulf %269, %244 : vector<16x128xf32>
    %cst_107 = arith.constant 1.000000e+00 : f32
    %276 = vector.broadcast %cst_107 : f32 to vector<16x128xf32>
    %277 = arith.subf %276, %269 : vector<16x128xf32>
    %278 = arith.mulf %277, %274 : vector<16x128xf32>
    %279 = arith.addf %275, %278 : vector<16x128xf32>
    %280 = arith.index_cast %c7_i32 : i32 to index
    %c0_108 = arith.constant 0 : index
    %c0_109 = arith.constant 0 : index
    %281 = vector.load %arg6[%280, %c0_108, %c0_109] : memref<8x16x128xf32, #tpu.memory_space<vmem>>, vector<1x16x128xf32>
    %282 = vector.shape_cast %281 : vector<1x16x128xf32> to vector<16x128xf32>
    %283 = vector.shape_cast %279 : vector<16x128xf32> to vector<1x16x128xf32>
    tpu.vector_store %arg6[%280, %c0_108, %c0_109], %283 {strides = array<i32>} : memref<8x16x128xf32, #tpu.memory_space<vmem>>, vector<1x16x128xf32>,
    %c8_i32 = arith.constant 8 : i32
    return
  }
}

</mosaic_0001>

<bundles_post_ra>
// kernel: tpu_custom_call.1
= control target key start
LH: loop header
LB: loop body
LE: loop exit
PB: predicated region body
PF: predicated region fallthrough
CT: control target
= control target key end

     0   :  { %11 = vsyncpa [#allocation3], 0  ;;  %s5214_s0 = inlined_call_operand.hbm [shape: f32[16,16], index: 0, kind: input, shape index: {}]   ;;  %s5215_s1 = inlined_call_operand.hbm [shape: f32[8,16,256], index: 1, kind: input, shape index: {}]   ;;  %s5216_s2 = inlined_call_operand.hbm [shape: f32[8,16,128], index: 2, kind: input, shape index: {}]   ;;  %s5217_s3 = inlined_call_operand.hbm [shape: f32[16,128], index: 3, kind: input, shape index: {}]   ;;  %s5218_s4 = inlined_call_operand.hbm [shape: f32[128,256], index: 4, kind: input, shape index: {}]   ;;  %s5219_s5 = inlined_call_operand.hbm [shape: f32[128,128], index: 5, kind: input, shape index: {}]   ;;  %s5220_s6 = inlined_call_operand.hbm [shape: f32[8,16,128], index: 6, kind: output, shape index: {}]  }
   0x1   :  { %12 = vsyncpa [#allocation6], 0 }
   0x2   :  { %13 = vsyncpa [#allocation9], 0 }
   0x3   :  { %14 = vsyncpa [#allocation12], 0 }
   0x4   :  { %15 = vsyncpa [#allocation4], 0  ;;  %s4552_s21 = smov [#allocation5]   ;;  %s4388_s25 = scalar_lea.hbm %s5215_s1, 4096 }
   0x5   :  { %s33_s22 = sshll.u32 %s4552_s21, 4  ;;  %p4389_p0 = scmp.ne.s32.totalorder %s5215_s1, %s4388_s25  ;;  %s34_s22 = int_to_ptr.vmem [resolvable:$true] %s33_s22 }
   0x6   :  { %p4392_p1 = scmp.lt.u32.totalorder %s4388_s25, %s5215_s1 }
   0x8   :  { %p4394_p2 = pnand %p4392_p1, %p4389_p0 }
   0xa   :  { %4397 = shalt.err (!%p4394_p2)
}
   0xb   :  { %s4398_s30 = scalar_lea.vmem %s34_s22, 4096  ;;  %p4403_p4 = scmp.lt.s32.totalorder %s34_s22, %s34_s22 }
   0xc   :  { %p4399_p3 = scmp.ne.s32.totalorder %s34_s22, %s4398_s30  ;;  %p4404_p5 = scmp.lt.s32.totalorder %s4398_s30, %s4398_s30 }
   0xe   :  { %p4405_p6 = por %p4404_p5, %p4403_p4 }
  0x10   :  { %p4406_p7 = pnand %p4405_p6, %p4399_p3 }
  0x12   :  { %4409 = shalt.err (!%p4406_p7)
}
  0x13   :  { %s4553_s7 = smov 256   ;;  %s4554_s8 = smov 16  }
  0x14   :  { %39 = dma.hbm_to_vmem [thread:$0]  %s5215_s1, 4096, %s34_s22, [#allocation6], %s4553_s7, %s4553_s7, %s4554_s8  }
  0x15   :  { %s4555_s11 = smov [#allocation8]   ;;  %s4556_s13 = smov [#allocation2]  }
  0x16   :  { %s57_s12 = sshll.u32 %s4555_s11, 4  ;;  %s21_s14 = sshll.u32 %s4556_s13, 4  ;;  %s58_s12 = int_to_ptr.vmem [resolvable:$true] %s57_s12  ;;  %s22_s14 = int_to_ptr.vmem [resolvable:$true] %s21_s14 }
  0x17   :  { %s4410_s17 = scalar_lea.hbm %s5217_s3, 256 }
  0x18   :  { %p4411_p8 = scmp.ne.s32.totalorder %s5217_s3, %s4410_s17  ;;  %p4414_p9 = scmp.lt.u32.totalorder %s4410_s17, %s5217_s3 }
  0x1a   :  { %p4416_p10 = pnand %p4414_p9, %p4411_p8 }
  0x1c   :  { %4419 = shalt.err (!%p4416_p10)
}
  0x1d   :  { %s4420_s1 = scalar_lea.vmem %s58_s12, 256  ;;  %p4425_p12 = scmp.lt.s32.totalorder %s58_s12, %s58_s12 }
  0x1e   :  { %p4421_p11 = scmp.ne.s32.totalorder %s58_s12, %s4420_s1  ;;  %p4426_p13 = scmp.lt.s32.totalorder %s4420_s1, %s4420_s1 }
  0x20   :  { %p4427_p0 = por %p4426_p13, %p4425_p12 }
  0x22   :  { %p4428_p1 = pnand %p4427_p0, %p4421_p11 }
  0x24   :  { %4431 = shalt.err (!%p4428_p1)
}
  0x25   :  { %s4557_s22 = smov 128   ;;  %s4558_s23 = smov 8  }
  0x26   :  { %63 = dma.hbm_to_vmem [thread:$0]  %s5217_s3, 256, %s58_s12, [#allocation9], %s4557_s22, %s4557_s22, %s4558_s23  }
  0x27   :  { %s4432_s28 = scalar_lea.hbm %s5214_s0, 256 }
  0x28   :  { %p4433_p2 = scmp.ne.s32.totalorder %s5214_s0, %s4432_s28  ;;  %p4436_p3 = scmp.lt.u32.totalorder %s4432_s28, %s5214_s0 }
  0x2a   :  { %p4438_p4 = pnand %p4436_p3, %p4433_p2 }
  0x2c   :  { %4441 = shalt.err (!%p4438_p4)
}
  0x2d   :  { %s4442_s11 = scalar_lea.vmem %s22_s14, 256  ;;  %p4447_p6 = scmp.lt.s32.totalorder %s22_s14, %s22_s14 }
  0x2e   :  { %p4443_p5 = scmp.ne.s32.totalorder %s22_s14, %s4442_s11  ;;  %p4448_p7 = scmp.lt.s32.totalorder %s4442_s11, %s4442_s11 }
  0x30   :  { %p4449_p8 = por %p4448_p7, %p4447_p6 }
  0x32   :  { %p4450_p9 = pnand %p4449_p8, %p4443_p5 }
  0x34   :  { %4453 = shalt.err (!%p4450_p9)
}
  0x35   :  { %27 = dma.hbm_to_vmem [thread:$0]  %s5214_s0, 256, %s22_s14, [#allocation3], %s4557_s22, %s4557_s22, %s4558_s23  }
  0x36   :  { %s4559_s13 = smov [#allocation7]   ;;  %s4560_s16 = smov [#allocation10]  }
  0x37   :  { %s45_s15 = sshll.u32 %s4559_s13, 4  ;;  %s69_s17 = sshll.u32 %s4560_s16, 4  ;;  %s46_s15 = int_to_ptr.vmem [resolvable:$true] %s45_s15  ;;  %s70_s17 = int_to_ptr.vmem [resolvable:$true] %s69_s17 }
  0x38   :  { %s4454_s20 = scalar_lea.hbm %s5216_s2, 2048 }
  0x39   :  { %p4455_p10 = scmp.ne.s32.totalorder %s5216_s2, %s4454_s20  ;;  %p4458_p11 = scmp.lt.u32.totalorder %s4454_s20, %s5216_s2 }
  0x3b   :  { %p4460_p12 = pnand %p4458_p11, %p4455_p10 }
  0x3d   :  { %4463 = shalt.err (!%p4460_p12)
}
  0x3e   :  { %s4464_s0 = scalar_lea.vmem %s46_s15, 2048  ;;  %p4469_p0 = scmp.lt.s32.totalorder %s46_s15, %s46_s15 }
  0x3f   :  { %p4465_p13 = scmp.ne.s32.totalorder %s46_s15, %s4464_s0  ;;  %p4470_p1 = scmp.lt.s32.totalorder %s4464_s0, %s4464_s0 }
  0x41   :  { %p4471_p2 = por %p4470_p1, %p4469_p0 }
  0x43   :  { %p4472_p3 = pnand %p4471_p2, %p4465_p13 }
  0x45   :  { %4475 = shalt.err (!%p4472_p3)
}
  0x46   :  { %51 = dma.hbm_to_vmem [thread:$0]  %s5216_s2, 2048, %s46_s15, [#allocation6], %s4557_s22, %s4557_s22, %s4558_s23  }
  0x47   :  { %s4476_s29 = scalar_lea.hbm %s5218_s4, 4096 }
  0x48   :  { %p4477_p4 = scmp.ne.s32.totalorder %s5218_s4, %s4476_s29  ;;  %p4480_p5 = scmp.lt.u32.totalorder %s4476_s29, %s5218_s4 }
  0x4a   :  { %p4482_p6 = pnand %p4480_p5, %p4477_p4 }
  0x4c   :  { %4485 = shalt.err (!%p4482_p6)
}
  0x4d   :  { %s4486_s3 = scalar_lea.vmem %s70_s17, 4096  ;;  %p4491_p8 = scmp.lt.s32.totalorder %s70_s17, %s70_s17 }
  0x4e   :  { %p4487_p7 = scmp.ne.s32.totalorder %s70_s17, %s4486_s3  ;;  %p4492_p9 = scmp.lt.s32.totalorder %s4486_s3, %s4486_s3 }
  0x50   :  { %p4493_p10 = por %p4492_p9, %p4491_p8 }
  0x52   :  { %p4494_p11 = pnand %p4493_p10, %p4487_p7 }
  0x54   :  { %4497 = shalt.err (!%p4494_p11)
}
  0x55   :  { %75 = dma.hbm_to_vmem [thread:$0]  %s5218_s4, 4096, %s70_s17, [#allocation9], %s4553_s7, %s4553_s7, %s4554_s8  }
  0x56   :  { %s4561_s13 = smov [#allocation11]   ;;  %s4498_s19 = scalar_lea.hbm %s5219_s5, 2048 }
  0x57   :  { %s81_s15 = sshll.u32 %s4561_s13, 4  ;;  %p4499_p12 = scmp.ne.s32.totalorder %s5219_s5, %s4498_s19  ;;  %s82_s15 = int_to_ptr.vmem [resolvable:$true] %s81_s15 }
  0x58   :  { %p4502_p13 = scmp.lt.u32.totalorder %s4498_s19, %s5219_s5 }
  0x5a   :  { %p4504_p0 = pnand %p4502_p13, %p4499_p12 }
  0x5c   :  { %4507 = shalt.err (!%p4504_p0)
}
  0x5d   :  { %s4508_s25 = scalar_lea.vmem %s82_s15, 2048  ;;  %p4513_p2 = scmp.lt.s32.totalorder %s82_s15, %s82_s15 }
  0x5e   :  { %p4509_p1 = scmp.ne.s32.totalorder %s82_s15, %s4508_s25  ;;  %p4514_p3 = scmp.lt.s32.totalorder %s4508_s25, %s4508_s25 }
  0x60   :  { %p4515_p4 = por %p4514_p3, %p4513_p2 }
  0x62   :  { %p4516_p5 = pnand %p4515_p4, %p4509_p1 }
  0x64   :  { %4519 = shalt.err (!%p4516_p5)
}
  0x65   :  { %87 = dma.hbm_to_vmem [thread:$0]  %s5219_s5, 2048, %s82_s15, [#allocation12], %s4557_s22, %s4557_s22, %s4558_s23  }
  0x66   :  { %4542 = dma.done.wait [#allocation3], 256  }
  0x67   :  { %4543 = vsyncadd [#allocation3], 4294967040 }
  0x68   :  { %4544 = dma.done.wait [#allocation6], 6144  }
  0x69   :  { %4545 = vsyncadd [#allocation6], 4294961152 }
  0x6a   :  { %4546 = dma.done.wait [#allocation9], 4352  }
  0x6b   :  { %4547 = vsyncadd [#allocation9], 4294962944 }
  0x6c   :  { %4548 = dma.done.wait [#allocation12], 2048  }
  0x6d   :  { %4549 = vsyncadd [#allocation12], 4294965248  ;;  %vm164_vm0 = vcmask 130048   ;;  %v4689_v0 = vld [vmem:[#allocation8] sm:$0xff]  ;;  %v4691_v1 = vld [vmem:[#allocation8 + $0x8] sm:$0xff]  ;;  %v4562_v53 = vmov 0.0  }
  0x6e   :  { %v4693_v2 = vld [vmem:[#allocation2] sm:$0xff]  ;;  %v3638_v3 = vpack.c.bf16 %v4691_v1, %v4689_v0  ;;  %v109_v4 = vld [vmem:[#allocation10 + $0x8] sm:$0xff]  ;;  %v111_v5 = vld [vmem:[#allocation10 + $0x18] sm:$0xff]  ;;  %310 = vmatprep.mubr.f32.mxu1 %v4562_v53  ;;  %s4563_s5 = smov [#allocation13]  }
  0x6f   :  { %3250 = vmatprep.mubr.msk.f32.mxu0 %vm164_vm0, %v4693_v2  ;;  %v4699_v6 = vpack.c.bf16 %v111_v5, %v109_v4  ;;  %v108_v7 = vld [vmem:[#allocation10] sm:$0xff]  ;;  %v110_v8 = vld [vmem:[#allocation10 + $0x10] sm:$0xff]  ;;  %v113_v9 = vld [vmem:[#allocation10 + $0x28] sm:$0xff]  ;;  %s2959_s8 = sshll.u32 %s4563_s5, 4  ;;  %s2960_s8 = int_to_ptr.vmem [resolvable:$true] %s2959_s8 }
  0x70   :  { %3639 = vmatprep.subr.bf16.mxu0 %v3638_v3  ;;  %v4701_v10 = vpack.c.bf16 %v110_v8, %v108_v7  ;;  %v115_v11 = vld [vmem:[#allocation10 + $0x38] sm:$0xff]  ;;  %v112_v12 = vld [vmem:[#allocation10 + $0x20] sm:$0xff]  ;;  %v114_v13 = vld [vmem:[#allocation10 + $0x30] sm:$0xff]  ;;  %s4520_s17 = scalar_lea.vmem %s2960_s8, 2048  ;;  %p4525_p7 = scmp.lt.s32.totalorder %s2960_s8, %s2960_s8 }
  0x71   :  { %3641 = vmatpush3.bf16.msra.mxu0 %v3638_v3  ;;  %v4703_v14 = vld [vmem:[#allocation2 + $0x8] sm:$0xff]  ;;  %3643 = vmatprep.subr.bf16.mxu1 %v4699_v6  ;;  %v4706_v15 = vpack.c.bf16 %v115_v11, %v113_v9  ;;  %v119_v17 = vld [vmem:[#allocation10 + $0x58] sm:$0xff]  ;;  %v4709_v18 = vpack.c.bf16 %v114_v13, %v112_v12  ;;  %v116_v20 = vld [vmem:[#allocation10 + $0x40] sm:$0xff]  ;;  %p4521_p6 = scmp.ne.s32.totalorder %s2960_s8, %s4520_s17  ;;  %p4526_p8 = scmp.lt.s32.totalorder %s4520_s17, %s4520_s17 }
  0x72   :  { %v117_v16 = vld [vmem:[#allocation10 + $0x48] sm:$0xff]  ;;  %3645 = vmatpush1.bf16.msra.mxu1 %v4701_v10  ;;  %v118_v21 = vld [vmem:[#allocation10 + $0x50] sm:$0xff]  ;;  %v123_v23 = vld [vmem:[#allocation10 + $0x78] sm:$0xff] }
  0x73   :  { %3647 = vmatprep.subr.bf16.mxu1 %v4706_v15  ;;  %v4712_v19 = vpack.c.bf16 %v119_v17, %v117_v16  ;;  %v121_v22 = vld [vmem:[#allocation10 + $0x68] sm:$0xff]  ;;  %v4719_v24 = vpack.c.bf16 %v118_v21, %v116_v20  ;;  %v120_v26 = vld [vmem:[#allocation10 + $0x60] sm:$0xff]  ;;  %v122_v27 = vld [vmem:[#allocation10 + $0x70] sm:$0xff]  ;;  %p4527_p9 = por %p4526_p8, %p4525_p7 }
  0x74   :  { %3251 = vmatmul.mubr.msk.f32.vlgmr.msra.gmra.mrb[0].mxu0 %vm164_vm0, %v4703_v14  ;;  %v4722_v25 = vpack.c.bf16 %v123_v23, %v121_v22  ;;  %v125_v28 = vld [vmem:[#allocation10 + $0x88] sm:$0xff]  ;;  %v127_v29 = vld [vmem:[#allocation10 + $0x98] sm:$0xff]  ;;  %v4725_v30 = vpack.c.bf16 %v122_v27, %v120_v26  ;;  %v124_v32 = vld [vmem:[#allocation10 + $0x80] sm:$0xff] }
  0x75   :  { %3257 = vmatprep.mubr.msk.f32.mxu0 %vm164_vm0, %v4693_v2  ;;  %v4728_v31 = vpack.c.bf16 %v127_v29, %v125_v28  ;;  %v126_v33 = vld [vmem:[#allocation10 + $0x90] sm:$0xff]  ;;  %v129_v34 = vld [vmem:[#allocation10 + $0xa8] sm:$0xff]  ;;  %v131_v35 = vld [vmem:[#allocation10 + $0xb8] sm:$0xff]  ;;  %p4528_p10 = pnand %p4527_p9, %p4521_p6 }
  0x76   :  { %3649 = vmatpush1.bf16.msra.mxu1 %v4709_v18  ;;  %v4731_v36 = vpack.c.bf16 %v126_v33, %v124_v32  ;;  %v4734_v37 = vpack.c.bf16 %v131_v35, %v129_v34  ;;  %v128_v38 = vld [vmem:[#allocation10 + $0xa0] sm:$0xff]  ;;  %v130_v39 = vld [vmem:[#allocation10 + $0xb0] sm:$0xff]  ;;  %v133_v40 = vld [vmem:[#allocation10 + $0xc8] sm:$0xff] }
  0x77   :  { %3651 = vmatprep.subr.bf16.mxu1 %v4712_v19  ;;  %v135_v41 = vld [vmem:[#allocation10 + $0xd8] sm:$0xff]  ;;  %v4737_v42 = vpack.c.bf16 %v130_v39, %v128_v38  ;;  %v132_v44 = vld [vmem:[#allocation10 + $0xc0] sm:$0xff]  ;;  %v134_v45 = vld [vmem:[#allocation10 + $0xd0] sm:$0xff] }
  0x78   :  { %v4740_v43 = vpack.c.bf16 %v135_v41, %v133_v40  ;;  %v137_v46 = vld [vmem:[#allocation10 + $0xe8] sm:$0xff]  ;;  %v139_v47 = vld [vmem:[#allocation10 + $0xf8] sm:$0xff]  ;;  %v4743_v48 = vpack.c.bf16 %v134_v45, %v132_v44  ;;  %v136_v50 = vld [vmem:[#allocation10 + $0xe0] sm:$0xff] }
  0x79   :  { %v4746_v49 = vpack.c.bf16 %v139_v47, %v137_v46  ;;  %v138_v51 = vld [vmem:[#allocation10 + $0xf0] sm:$0xff]  ;;  %v160_v60 = vld [vmem:[#allocation5 + $0x10] sm:$0xff]  ;;  %v141_v16 = vld [vmem:[#allocation11 + $0x8] sm:$0xff] }
  0x7a   :  { %3653 = vmatpush1.bf16.msra.mxu1 %v4719_v24  ;;  %v4749_v52 = vpack.c.bf16 %v138_v51, %v136_v50  ;;  %v158_v56 = vld [vmem:[#allocation5] sm:$0xff]  ;;  %v140_v13 = vld [vmem:[#allocation11] sm:$0xff]  ;;  %v143_v26 = vld [vmem:[#allocation11 + $0x18] sm:$0xff] }
  0x7b   :  { %3655 = vmatprep.subr.bf16.mxu1 %v4722_v25  ;;  %v4763_v22 = vpack.c.bf16 %v141_v16, %v140_v13  ;;  %v142_v23 = vld [vmem:[#allocation11 + $0x10] sm:$0xff]  ;;  %v144_v28 = vld [vmem:[#allocation11 + $0x20] sm:$0xff]  ;;  %v145_v29 = vld [vmem:[#allocation11 + $0x28] sm:$0xff] }
  0x7c   :  { %v4766_v27 = vpack.c.bf16 %v143_v26, %v142_v23  ;;  %v4772_v32 = vpack.c.bf16 %v145_v29, %v144_v28  ;;  %v146_v33 = vld [vmem:[#allocation11 + $0x30] sm:$0xff]  ;;  %v147_v34 = vld [vmem:[#allocation11 + $0x38] sm:$0xff]  ;;  %v148_v38 = vld [vmem:[#allocation11 + $0x40] sm:$0xff] }
  0x7d   :  { %v4776_v35 = vpack.c.bf16 %v147_v34, %v146_v33  ;;  %v149_v39 = vld [vmem:[#allocation11 + $0x48] sm:$0xff]  ;;  %v150_v41 = vld [vmem:[#allocation11 + $0x50] sm:$0xff]  ;;  %v151_v44 = vld [vmem:[#allocation11 + $0x58] sm:$0xff] }
  0x7e   :  { %3657 = vmatpush1.bf16.msra.mxu1 %v4725_v30  ;;  %v4780_v40 = vpack.c.bf16 %v149_v39, %v148_v38  ;;  %v4784_v45 = vpack.c.bf16 %v151_v44, %v150_v41  ;;  %v152_v46 = vld [vmem:[#allocation11 + $0x60] sm:$0xff]  ;;  %v153_v47 = vld [vmem:[#allocation11 + $0x68] sm:$0xff]  ;;  %v154_v51 = vld [vmem:[#allocation11 + $0x70] sm:$0xff] }
  0x7f   :  { %3659 = vmatprep.subr.bf16.mxu1 %v4728_v31  ;;  %v4788_v50 = vpack.c.bf16 %v153_v47, %v152_v46  ;;  %v512_v46 = vld [vmem:[#allocation5 + $0x20] sm:$0xff] }
  0x82   :  { %3661 = vmatpush1.bf16.msra.mxu1 %v4731_v36 }
  0x83   :  { %3663 = vmatprep.subr.bf16.mxu1 %v4734_v37 }
  0x86   :  { %3665 = vmatpush1.bf16.msra.mxu1 %v4737_v42 }
  0x87   :  { %3667 = vmatprep.subr.bf16.mxu1 %v4740_v43 }
  0x8a   :  { %3669 = vmatpush1.bf16.msra.mxu1 %v4743_v48 }
  0x8b   :  { %3671 = vmatprep.subr.bf16.mxu1 %v4746_v49 }
  0x8e   :  { %3673 = vmatpush1.bf16.msra.mxu1 %v4749_v52 }
 0x147   :  { %v3252_v54 = vpop.f32.mrb[0].mxu0 }
 0x148   :  { %v237_v55 = vpop.f32.mrb[1].mxu0 }
 0x149   :  { %311 = vmatmul.mubr.f32.vlgmr.msra.gmra.mrb[0].mxu1 %v237_v55 }
 0x14a   :  { %316 = vmatprep.mubr.f32.mxu1 %v4562_v53 }
 0x14d   :  { %317 = vmatmul.mubr.f32.gmra.mrb[2].mxu1 %v3252_v54  ;;  %v155_v54 = vld [vmem:[#allocation11 + $0x78] sm:$0xff] }
 0x14e   :  { %3299 = vmatprep.mubr.msk.f32.mxu1 %vm164_vm0, %v4693_v2  ;;  %v4792_v55 = vpack.c.bf16 %v155_v54, %v154_v51 }
 0x21c   :  { %v312_v57 = vpop.f32.mrb[0].mxu1 }
 0x21d   :  { %v313_v58 = vadd.f32 %v312_v57, %v158_v56  ;;  %v4757_v59 = vpop.f32.mrb[1].mxu1 }
 0x21f   :  { %v2976_v61 = vmul.f32 -1.442695, %v313_v58  ;;  %v161_v58 = vld [vmem:[#allocation5 + $0x18] sm:$0xff] }
 0x220   :  { %v318_v62 = vpop.f32.mrb[2].mxu1 }
 0x221   :  { %4226 = vpow2.f32 %v2976_v61  ;;  %v319_v63 = vadd.f32 %v318_v62, %v160_v60  ;;  %v4759_v3 = vpop.f32.mrb[3].mxu1  ;;  %v159_v60 = vld [vmem:[#allocation5 + $0x8] sm:$0xff] }
 0x222   :  { %v321_v61 = vadd.f32 %v4759_v3, %v161_v58  ;;  %v315_v62 = vadd.f32 %v4757_v59, %v159_v60 }
 0x223   :  { %v2977_v4 = vmul.f32 -1.442695, %v319_v63 }
 0x224   :  { %v2979_v63 = vmul.f32 -1.442695, %v321_v61 }
 0x225   :  { %4228 = vpow2.f32 %v2977_v4  ;;  %v2978_v4 = vmul.f32 -1.442695, %v315_v62 }
 0x22b   :  { %v4227_v5 = vpop.eup %4226 }
 0x22c   :  { %v329_v7 = vadd.f32 1.0, %v4227_v5 }
 0x22e   :  { %4230 = vrcp.f32 %v329_v7 }
 0x22f   :  { %v4229_v8 = vpop.eup %4228 }
 0x230   :  { %v330_v9 = vadd.f32 1.0, %v4229_v8 }
 0x232   :  { %4232 = vrcp.f32 %v330_v9 }
 0x233   :  { %4234 = vpow2.f32 %v2979_v63 }
 0x234   :  { %4236 = vpow2.f32 %v2978_v4 }
 0x238   :  { %v4231_v11 = vpop.eup %4230 }
 0x239   :  { %v347_v17 = vmul.f32 %v4231_v11, %v4689_v0  ;;  %v163_v11 = vld [vmem:[#allocation7 + $0x8] sm:$0xff] }
 0x23c   :  { %v4233_v12 = vpop.eup %4232 }
 0x23d   :  { %v348_v20 = vmul.f32 %v4233_v12, %v4691_v1  ;;  %v4235_v5 = vpop.eup %4234  ;;  %v162_v12 = vld [vmem:[#allocation7] sm:$0xff] }
 0x23e   :  { %v4237_v7 = vpop.eup %4236  ;;  %v342_v8 = vadd.f32 1.0, %v4235_v5 }
 0x23f   :  { %v3674_v21 = vpack.c.bf16 %v348_v20, %v347_v17  ;;  %v341_v9 = vadd.f32 1.0, %v4237_v7 }
 0x240   :  { %4238 = vrcp.f32 %v342_v8 }
 0x241   :  { %3675 = vmatprep.subr.bf16.mxu0 %v3674_v21  ;;  %4240 = vrcp.f32 %v341_v9 }
 0x242   :  { %3677 = vmatpush3.bf16.msra.mxu0 %v3674_v21 }
 0x243   :  { %3679 = vmatprep.subr.bf16.mxu0 %v4763_v22 }
 0x245   :  { %3258 = vmatmul.mubr.msk.f32.vlgmr.msra.gmra.mrb[2].mxu0 %vm164_vm0, %v4703_v14 }
 0x246   :  { %3681 = vmatpush3.bf16.msra.mxu0 %v4763_v22 }
 0x247   :  { %3683 = vmatprep.subr.bf16.mxu0 %v4766_v27 }
 0x24a   :  { %3685 = vmatpush3.bf16.msra.mxu0 %v4766_v27  ;;  %v4239_v3 = vpop.eup %4238 }
 0x24b   :  { %3687 = vmatprep.subr.bf16.mxu0 %v4772_v32  ;;  %v4241_v59 = vpop.eup %4240  ;;  %v504_v21 = vsub.f32 1.0, %v4239_v3  ;;  %v502_v33 = vmul.f32 %v4239_v3, %v4691_v1  ;;  %v513_v3 = vld [vmem:[#allocation5 + $0x28] sm:$0xff] }
 0x24c   :  { %v503_v26 = vsub.f32 1.0, %v4241_v59  ;;  %v501_v38 = vmul.f32 %v4241_v59, %v4689_v0 }
 0x24e   :  { %3689 = vmatpush3.bf16.msra.mxu0 %v4772_v32 }
 0x24f   :  { %3691 = vmatprep.subr.bf16.mxu0 %v4776_v35 }
 0x252   :  { %3693 = vmatpush3.bf16.msra.mxu0 %v4776_v35 }
 0x253   :  { %3695 = vmatprep.subr.bf16.mxu0 %v4780_v40 }
 0x256   :  { %3697 = vmatpush3.bf16.msra.mxu0 %v4780_v40 }
 0x257   :  { %3699 = vmatprep.subr.bf16.mxu0 %v4784_v45 }
 0x25a   :  { %3701 = vmatpush3.bf16.msra.mxu0 %v4784_v45 }
 0x25b   :  { %3703 = vmatprep.subr.bf16.mxu0 %v4788_v50 }
 0x25e   :  { %3705 = vmatpush3.bf16.msra.mxu0 %v4788_v50 }
 0x25f   :  { %3707 = vmatprep.subr.bf16.mxu0 %v4792_v55 }
 0x262   :  { %3709 = vmatpush3.bf16.msra.mxu0 %v4792_v55 }
 0x263   :  { %3715 = vmatprep.subr.bf16.mxu0 %v4699_v6 }
 0x318   :  { %v3259_v56 = vpop.f32.mrb[2].mxu0 }
 0x319   :  { %v415_v57 = vpop.f32.mrb[3].mxu0 }
 0x31a   :  { %3292 = vmatprep.mubr.f32.mxu0 %v415_v57 }
 0x31b   :  { %3293 = vmatmul.mubr.f32.vlgmr.msra.gmra.mrb[4].mxu0 %v3259_v56  ;;  %v514_v56 = vld [vmem:[#allocation5 + $0x30] sm:$0xff] }
 0x31c   :  { %3717 = vmatpush1.bf16.msra.mxu0 %v4701_v10  ;;  %658 = vmatprep.mubr.f32.mxu0 %v4562_v53 }
 0x31d   :  { %3719 = vmatprep.subr.bf16.mxu0 %v4706_v15 }
 0x320   :  { %3721 = vmatpush1.bf16.msra.mxu0 %v4709_v18 }
 0x321   :  { %3723 = vmatprep.subr.bf16.mxu0 %v4712_v19 }
 0x324   :  { %3725 = vmatpush1.bf16.msra.mxu0 %v4719_v24 }
 0x325   :  { %3727 = vmatprep.subr.bf16.mxu0 %v4722_v25 }
 0x328   :  { %3729 = vmatpush1.bf16.msra.mxu0 %v4725_v30 }
 0x329   :  { %3731 = vmatprep.subr.bf16.mxu0 %v4728_v31 }
 0x32c   :  { %3733 = vmatpush1.bf16.msra.mxu0 %v4731_v36 }
 0x32d   :  { %3735 = vmatprep.subr.bf16.mxu0 %v4734_v37 }
 0x330   :  { %3737 = vmatpush1.bf16.msra.mxu0 %v4737_v42 }
 0x331   :  { %3739 = vmatprep.subr.bf16.mxu0 %v4740_v43 }
 0x334   :  { %3741 = vmatpush1.bf16.msra.mxu0 %v4743_v48 }
 0x335   :  { %3743 = vmatprep.subr.bf16.mxu0 %v4746_v49 }
 0x338   :  { %3745 = vmatpush1.bf16.msra.mxu0 %v4749_v52 }
 0x3ee   :  { %v3294_v13 = vpop.f32.mrb[4].mxu0 }
 0x3ef   :  { %v496_v16 = vadd.f32 %v3294_v13, %v163_v11  ;;  %v490_v17 = vpop.f32.mrb[5].mxu0 }
 0x3f0   :  { %v491_v20 = vadd.f32 %v490_v17, %v162_v12 }
 0x3f1   :  { %4242 = vtanh.f32 %v496_v16 }
 0x3f2   :  { %4244 = vtanh.f32 %v491_v20  ;;  %v515_v20 = vld [vmem:[#allocation5 + $0x38] sm:$0xff] }
 0x3fb   :  { %v4243_v23 = vpop.eup %4242 }
 0x3fc   :  { %v4245_v28 = vpop.eup %4244  ;;  %v506_v29 = vmul.f32 %v4243_v23, %v504_v21 }
 0x3fd   :  { %v505_v34 = vmul.f32 %v4245_v28, %v503_v26 }
 0x3fe   :  { %v4818_v39 = vadd.f32 %v506_v29, %v502_v33 }
 0x3ff   :  { %v4820_v41 = vadd.f32 %v505_v34, %v501_v38  ;;  %v518_v38 = vld [vmem:[#allocation7 + $0x18] sm:$0xff] }
 0x400   :  { %510 = vst [vmem:[#allocation13 + $0x8] sm:$0xff] %v4818_v39 }
 0x401   :  { %509 = vst [vmem:[#allocation13] sm:$0xff] %v4820_v41  ;;  %v3710_v44 = vpack.c.bf16 %v4818_v39, %v4820_v41 }
 0x403   :  { %3711 = vmatprep.subr.bf16.mxu1 %v3710_v44 }
 0x404   :  { %3713 = vmatpush3.bf16.msra.mxu1 %v3710_v44  ;;  %v517_v44 = vld [vmem:[#allocation7 + $0x10] sm:$0xff] }
 0x407   :  { %3300 = vmatmul.mubr.msk.f32.vlgmr.msra.gmra.mrb[4].mxu1 %vm164_vm0, %v4703_v14 }
 0x408   :  { %3306 = vmatprep.mubr.msk.f32.mxu1 %vm164_vm0, %v4693_v2 }
 0x4da   :  { %v3301_v0 = vpop.f32.mrb[4].mxu1 }
 0x4db   :  { %v585_v1 = vpop.f32.mrb[5].mxu1 }
 0x4dc   :  { %659 = vmatmul.mubr.f32.vlgmr.msra.gmra.mrb[6].mxu0 %v585_v1 }
 0x4dd   :  { %664 = vmatprep.mubr.f32.mxu0 %v4562_v53 }
 0x4e0   :  { %665 = vmatmul.mubr.f32.gmra.mrb[8].mxu0 %v3301_v0 }
 0x4e1   :  { %3348 = vmatprep.mubr.msk.f32.mxu0 %vm164_vm0, %v4693_v2 }
 0x5af   :  { %v660_v47 = vpop.f32.mrb[6].mxu0 }
 0x5b0   :  { %v661_v51 = vadd.f32 %v660_v47, %v512_v46  ;;  %v4833_v54 = vpop.f32.mrb[7].mxu0 }
 0x5b1   :  { %v663_v21 = vadd.f32 %v4833_v54, %v513_v3 }
 0x5b2   :  { %v2984_v57 = vmul.f32 -1.442695, %v661_v51 }
 0x5b3   :  { %v666_v58 = vpop.f32.mrb[8].mxu0  ;;  %v2986_v26 = vmul.f32 -1.442695, %v663_v21 }
 0x5b4   :  { %4246 = vpow2.f32 %v2984_v57  ;;  %v667_v60 = vadd.f32 %v666_v58, %v514_v56  ;;  %v668_v61 = vpop.f32.mrb[9].mxu0 }
 0x5b5   :  { %v669_v59 = vadd.f32 %v668_v61, %v515_v20 }
 0x5b6   :  { %v2985_v62 = vmul.f32 -1.442695, %v667_v60 }
 0x5b7   :  { %v2987_v23 = vmul.f32 -1.442695, %v669_v59 }
 0x5b8   :  { %4248 = vpow2.f32 %v2985_v62 }
 0x5be   :  { %v4247_v63 = vpop.eup %4246 }
 0x5bf   :  { %v677_v4 = vadd.f32 1.0, %v4247_v63 }
 0x5c1   :  { %4250 = vrcp.f32 %v677_v4 }
 0x5c2   :  { %v4249_v5 = vpop.eup %4248 }
 0x5c3   :  { %v678_v7 = vadd.f32 1.0, %v4249_v5 }
 0x5c5   :  { %4252 = vrcp.f32 %v678_v7 }
 0x5c6   :  { %4254 = vpow2.f32 %v2987_v23 }
 0x5c7   :  { %4256 = vpow2.f32 %v2986_v26 }
 0x5cb   :  { %v4251_v8 = vpop.eup %4250 }
 0x5cc   :  { %v695_v11 = vmul.f32 %v4251_v8, %v4820_v41 }
 0x5cf   :  { %v4253_v9 = vpop.eup %4252 }
 0x5d0   :  { %v696_v12 = vmul.f32 %v4253_v9, %v4818_v39  ;;  %v4255_v28 = vpop.eup %4254  ;;  %v861_v9 = vld [vmem:[#allocation5 + $0x40] sm:$0xff] }
 0x5d1   :  { %v4257_v29 = vpop.eup %4256  ;;  %v690_v33 = vadd.f32 1.0, %v4255_v28 }
 0x5d2   :  { %v3746_v13 = vpack.c.bf16 %v696_v12, %v695_v11  ;;  %v689_v34 = vadd.f32 1.0, %v4257_v29 }
 0x5d3   :  { %4258 = vrcp.f32 %v690_v33 }
 0x5d4   :  { %3747 = vmatprep.subr.bf16.mxu1 %v3746_v13  ;;  %4260 = vrcp.f32 %v689_v34 }
 0x5d5   :  { %3749 = vmatpush3.bf16.msra.mxu1 %v3746_v13 }
 0x5d6   :  { %3751 = vmatprep.subr.bf16.mxu1 %v4763_v22 }
 0x5d8   :  { %3307 = vmatmul.mubr.msk.f32.vlgmr.msra.gmra.mrb[6].mxu1 %vm164_vm0, %v4703_v14 }
 0x5d9   :  { %3753 = vmatpush3.bf16.msra.mxu1 %v4763_v22 }
 0x5da   :  { %3755 = vmatprep.subr.bf16.mxu1 %v4766_v27 }
 0x5dd   :  { %3757 = vmatpush3.bf16.msra.mxu1 %v4766_v27  ;;  %v4259_v51 = vpop.eup %4258 }
 0x5de   :  { %3759 = vmatprep.subr.bf16.mxu1 %v4772_v32  ;;  %v4261_v54 = vpop.eup %4260  ;;  %v852_v56 = vsub.f32 1.0, %v4259_v51  ;;  %v850_v62 = vmul.f32 %v4259_v51, %v4818_v39  ;;  %v862_v51 = vld [vmem:[#allocation5 + $0x48] sm:$0xff] }
 0x5df   :  { %v851_v58 = vsub.f32 1.0, %v4261_v54  ;;  %v849_v4 = vmul.f32 %v4261_v54, %v4820_v41 }
 0x5e1   :  { %3761 = vmatpush3.bf16.msra.mxu1 %v4772_v32 }
 0x5e2   :  { %3763 = vmatprep.subr.bf16.mxu1 %v4776_v35 }
 0x5e5   :  { %3765 = vmatpush3.bf16.msra.mxu1 %v4776_v35 }
 0x5e6   :  { %3767 = vmatprep.subr.bf16.mxu1 %v4780_v40 }
 0x5e9   :  { %3769 = vmatpush3.bf16.msra.mxu1 %v4780_v40 }
 0x5ea   :  { %3771 = vmatprep.subr.bf16.mxu1 %v4784_v45 }
 0x5ed   :  { %3773 = vmatpush3.bf16.msra.mxu1 %v4784_v45 }
 0x5ee   :  { %3775 = vmatprep.subr.bf16.mxu1 %v4788_v50 }
 0x5f1   :  { %3777 = vmatpush3.bf16.msra.mxu1 %v4788_v50 }
 0x5f2   :  { %3779 = vmatprep.subr.bf16.mxu1 %v4792_v55 }
 0x5f5   :  { %3781 = vmatpush3.bf16.msra.mxu1 %v4792_v55 }
 0x5f6   :  { %3787 = vmatprep.subr.bf16.mxu1 %v4699_v6 }
 0x6ab   :  { %v3308_v16 = vpop.f32.mrb[6].mxu1 }
 0x6ac   :  { %v763_v17 = vpop.f32.mrb[7].mxu1 }
 0x6ad   :  { %3341 = vmatprep.mubr.f32.mxu1 %v763_v17 }
 0x6ae   :  { %3342 = vmatmul.mubr.f32.vlgmr.msra.gmra.mrb[8].mxu1 %v3308_v16  ;;  %v863_v16 = vld [vmem:[#allocation5 + $0x50] sm:$0xff] }
 0x6af   :  { %3789 = vmatpush1.bf16.msra.mxu1 %v4701_v10  ;;  %1007 = vmatprep.mubr.f32.mxu1 %v4562_v53 }
 0x6b0   :  { %3791 = vmatprep.subr.bf16.mxu1 %v4706_v15 }
 0x6b3   :  { %3793 = vmatpush1.bf16.msra.mxu1 %v4709_v18 }
 0x6b4   :  { %3795 = vmatprep.subr.bf16.mxu1 %v4712_v19 }
 0x6b7   :  { %3797 = vmatpush1.bf16.msra.mxu1 %v4719_v24 }
 0x6b8   :  { %3799 = vmatprep.subr.bf16.mxu1 %v4722_v25 }
 0x6bb   :  { %3801 = vmatpush1.bf16.msra.mxu1 %v4725_v30 }
 0x6bc   :  { %3803 = vmatprep.subr.bf16.mxu1 %v4728_v31 }
 0x6bf   :  { %3805 = vmatpush1.bf16.msra.mxu1 %v4731_v36 }
 0x6c0   :  { %3807 = vmatprep.subr.bf16.mxu1 %v4734_v37 }
 0x6c3   :  { %3809 = vmatpush1.bf16.msra.mxu1 %v4737_v42 }
 0x6c4   :  { %3811 = vmatprep.subr.bf16.mxu1 %v4740_v43 }
 0x6c7   :  { %3813 = vmatpush1.bf16.msra.mxu1 %v4743_v48 }
 0x6c8   :  { %3815 = vmatprep.subr.bf16.mxu1 %v4746_v49 }
 0x6cb   :  { %3817 = vmatpush1.bf16.msra.mxu1 %v4749_v52 }
 0x781   :  { %v3343_v0 = vpop.f32.mrb[8].mxu1 }
 0x782   :  { %v844_v1 = vadd.f32 %v3343_v0, %v518_v38  ;;  %v838_v46 = vpop.f32.mrb[9].mxu1 }
 0x783   :  { %v839_v47 = vadd.f32 %v838_v46, %v517_v44 }
 0x784   :  { %4262 = vtanh.f32 %v844_v1 }
 0x785   :  { %4264 = vtanh.f32 %v839_v47  ;;  %v864_v47 = vld [vmem:[#allocation5 + $0x58] sm:$0xff] }
 0x78e   :  { %v4263_v57 = vpop.eup %4262 }
 0x78f   :  { %v4265_v60 = vpop.eup %4264  ;;  %v854_v61 = vmul.f32 %v4263_v57, %v852_v56 }
 0x790   :  { %v853_v63 = vmul.f32 %v4265_v60, %v851_v58 }
 0x791   :  { %v4875_v5 = vadd.f32 %v854_v61, %v850_v62 }
 0x792   :  { %v4877_v7 = vadd.f32 %v853_v63, %v849_v4  ;;  %v867_v4 = vld [vmem:[#allocation7 + $0x28] sm:$0xff] }
 0x793   :  { %859 = vst [vmem:[#allocation13 + $0x18] sm:$0xff] %v4875_v5 }
 0x794   :  { %858 = vst [vmem:[#allocation13 + $0x10] sm:$0xff] %v4877_v7  ;;  %v3782_v8 = vpack.c.bf16 %v4875_v5, %v4877_v7 }
 0x796   :  { %3783 = vmatprep.subr.bf16.mxu0 %v3782_v8 }
 0x797   :  { %3785 = vmatpush3.bf16.msra.mxu0 %v3782_v8  ;;  %v866_v8 = vld [vmem:[#allocation7 + $0x20] sm:$0xff] }
 0x79a   :  { %3349 = vmatmul.mubr.msk.f32.vlgmr.msra.gmra.mrb[10].mxu0 %vm164_vm0, %v4703_v14 }
 0x79b   :  { %3355 = vmatprep.mubr.msk.f32.mxu0 %vm164_vm0, %v4693_v2 }
 0x86d   :  { %v3350_v39 = vpop.f32.mrb[10].mxu0 }
 0x86e   :  { %v934_v41 = vpop.f32.mrb[11].mxu0 }
 0x86f   :  { %1008 = vmatmul.mubr.f32.vlgmr.msra.gmra.mrb[10].mxu1 %v934_v41 }
 0x870   :  { %1013 = vmatprep.mubr.f32.mxu1 %v4562_v53 }
 0x873   :  { %1014 = vmatmul.mubr.f32.gmra.mrb[12].mxu1 %v3350_v39 }
 0x874   :  { %3397 = vmatprep.mubr.msk.f32.mxu1 %vm164_vm0, %v4693_v2 }
 0x942   :  { %v1009_v11 = vpop.f32.mrb[10].mxu1 }
 0x943   :  { %v1010_v12 = vadd.f32 %v1009_v11, %v861_v9  ;;  %v4890_v13 = vpop.f32.mrb[11].mxu1 }
 0x944   :  { %v1012_v56 = vadd.f32 %v4890_v13, %v862_v51 }
 0x945   :  { %v2992_v17 = vmul.f32 -1.442695, %v1010_v12 }
 0x946   :  { %v1015_v20 = vpop.f32.mrb[12].mxu1  ;;  %v2994_v58 = vmul.f32 -1.442695, %v1012_v56 }
 0x947   :  { %4266 = vpow2.f32 %v2992_v17  ;;  %v1016_v3 = vadd.f32 %v1015_v20, %v863_v16  ;;  %v1017_v59 = vpop.f32.mrb[13].mxu1 }
 0x948   :  { %v1018_v54 = vadd.f32 %v1017_v59, %v864_v47 }
 0x949   :  { %v2993_v21 = vmul.f32 -1.442695, %v1016_v3 }
 0x94a   :  { %v2995_v57 = vmul.f32 -1.442695, %v1018_v54 }
 0x94b   :  { %4268 = vpow2.f32 %v2993_v21 }
 0x951   :  { %v4267_v23 = vpop.eup %4266 }
 0x952   :  { %v1026_v26 = vadd.f32 1.0, %v4267_v23 }
 0x954   :  { %4270 = vrcp.f32 %v1026_v26 }
 0x955   :  { %v4269_v28 = vpop.eup %4268 }
 0x956   :  { %v1027_v29 = vadd.f32 1.0, %v4269_v28 }
 0x958   :  { %4272 = vrcp.f32 %v1027_v29 }
 0x959   :  { %4274 = vpow2.f32 %v2995_v57 }
 0x95a   :  { %4276 = vpow2.f32 %v2994_v58 }
 0x95e   :  { %v4271_v33 = vpop.eup %4270 }
 0x95f   :  { %v1044_v38 = vmul.f32 %v4271_v33, %v4877_v7 }
 0x962   :  { %v4273_v34 = vpop.eup %4272 }
 0x963   :  { %v1045_v44 = vmul.f32 %v4273_v34, %v4875_v5  ;;  %v4275_v60 = vpop.eup %4274  ;;  %v1210_v34 = vld [vmem:[#allocation5 + $0x60] sm:$0xff] }
 0x964   :  { %v4277_v61 = vpop.eup %4276  ;;  %v1039_v62 = vadd.f32 1.0, %v4275_v60 }
 0x965   :  { %v3818_v0 = vpack.c.bf16 %v1045_v44, %v1044_v38  ;;  %v1038_v63 = vadd.f32 1.0, %v4277_v61 }
 0x966   :  { %4278 = vrcp.f32 %v1039_v62 }
 0x967   :  { %3819 = vmatprep.subr.bf16.mxu0 %v3818_v0  ;;  %4280 = vrcp.f32 %v1038_v63 }
 0x968   :  { %3821 = vmatpush3.bf16.msra.mxu0 %v3818_v0 }
 0x969   :  { %3823 = vmatprep.subr.bf16.mxu0 %v4763_v22 }
 0x96b   :  { %3356 = vmatmul.mubr.msk.f32.vlgmr.msra.gmra.mrb[12].mxu0 %vm164_vm0, %v4703_v14 }
 0x96c   :  { %3825 = vmatpush3.bf16.msra.mxu0 %v4763_v22 }
 0x96d   :  { %3827 = vmatprep.subr.bf16.mxu0 %v4766_v27 }
 0x970   :  { %3829 = vmatpush3.bf16.msra.mxu0 %v4766_v27  ;;  %v4279_v12 = vpop.eup %4278 }
 0x971   :  { %3831 = vmatprep.subr.bf16.mxu0 %v4772_v32  ;;  %v4281_v13 = vpop.eup %4280  ;;  %v1201_v16 = vsub.f32 1.0, %v4279_v12  ;;  %v1199_v21 = vmul.f32 %v4279_v12, %v4875_v5 }
 0x972   :  { %v1200_v20 = vsub.f32 1.0, %v4281_v13  ;;  %v1198_v26 = vmul.f32 %v4281_v13, %v4877_v7 }
 0x974   :  { %3833 = vmatpush3.bf16.msra.mxu0 %v4772_v32 }
 0x975   :  { %3835 = vmatprep.subr.bf16.mxu0 %v4776_v35 }
 0x978   :  { %3837 = vmatpush3.bf16.msra.mxu0 %v4776_v35 }
 0x979   :  { %3839 = vmatprep.subr.bf16.mxu0 %v4780_v40 }
 0x97c   :  { %3841 = vmatpush3.bf16.msra.mxu0 %v4780_v40 }
 0x97d   :  { %3843 = vmatprep.subr.bf16.mxu0 %v4784_v45 }
 0x980   :  { %3845 = vmatpush3.bf16.msra.mxu0 %v4784_v45 }
 0x981   :  { %3847 = vmatprep.subr.bf16.mxu0 %v4788_v50 }
 0x984   :  { %3849 = vmatpush3.bf16.msra.mxu0 %v4788_v50 }
 0x985   :  { %3851 = vmatprep.subr.bf16.mxu0 %v4792_v55 }
 0x988   :  { %3853 = vmatpush3.bf16.msra.mxu0 %v4792_v55 }
 0x989   :  { %3859 = vmatprep.subr.bf16.mxu0 %v4699_v6 }
 0xa3e   :  { %v3357_v1 = vpop.f32.mrb[12].mxu0 }
 0xa3f   :  { %v1112_v46 = vpop.f32.mrb[13].mxu0 }
 0xa40   :  { %3390 = vmatprep.mubr.f32.mxu0 %v1112_v46 }
 0xa41   :  { %3391 = vmatmul.mubr.f32.vlgmr.msra.gmra.mrb[14].mxu0 %v3357_v1  ;;  %v1212_v1 = vld [vmem:[#allocation5 + $0x70] sm:$0xff] }
 0xa42   :  { %3861 = vmatpush1.bf16.msra.mxu0 %v4701_v10  ;;  %1356 = vmatprep.mubr.f32.mxu0 %v4562_v53 }
 0xa43   :  { %3863 = vmatprep.subr.bf16.mxu0 %v4706_v15 }
 0xa46   :  { %3865 = vmatpush1.bf16.msra.mxu0 %v4709_v18 }
 0xa47   :  { %3867 = vmatprep.subr.bf16.mxu0 %v4712_v19 }
 0xa4a   :  { %3869 = vmatpush1.bf16.msra.mxu0 %v4719_v24 }
 0xa4b   :  { %3871 = vmatprep.subr.bf16.mxu0 %v4722_v25 }
 0xa4e   :  { %3873 = vmatpush1.bf16.msra.mxu0 %v4725_v30 }
 0xa4f   :  { %3875 = vmatprep.subr.bf16.mxu0 %v4728_v31 }
 0xa52   :  { %3877 = vmatpush1.bf16.msra.mxu0 %v4731_v36 }
 0xa53   :  { %3879 = vmatprep.subr.bf16.mxu0 %v4734_v37 }
 0xa56   :  { %3881 = vmatpush1.bf16.msra.mxu0 %v4737_v42 }
 0xa57   :  { %3883 = vmatprep.subr.bf16.mxu0 %v4740_v43 }
 0xa5a   :  { %3885 = vmatpush1.bf16.msra.mxu0 %v4743_v48 }
 0xa5b   :  { %3887 = vmatprep.subr.bf16.mxu0 %v4746_v49 }
 0xa5e   :  { %3889 = vmatpush1.bf16.msra.mxu0 %v4749_v52 }
 0xb14   :  { %v3392_v39 = vpop.f32.mrb[14].mxu0 }
 0xb15   :  { %v1193_v41 = vadd.f32 %v3392_v39, %v867_v4  ;;  %v1187_v9 = vpop.f32.mrb[15].mxu0 }
 0xb16   :  { %v1188_v11 = vadd.f32 %v1187_v9, %v866_v8  ;;  %v1211_v9 = vld [vmem:[#allocation5 + $0x68] sm:$0xff] }
 0xb17   :  { %4282 = vtanh.f32 %v1193_v41  ;;  %v1213_v41 = vld [vmem:[#allocation5 + $0x78] sm:$0xff] }
 0xb18   :  { %4284 = vtanh.f32 %v1188_v11 }
 0xb21   :  { %v4283_v17 = vpop.eup %4282 }
 0xb22   :  { %v4285_v3 = vpop.eup %4284  ;;  %v1203_v59 = vmul.f32 %v4283_v17, %v1201_v16 }
 0xb23   :  { %v1202_v23 = vmul.f32 %v4285_v3, %v1200_v20 }
 0xb24   :  { %v4932_v28 = vadd.f32 %v1203_v59, %v1199_v21  ;;  %v1216_v21 = vld [vmem:[#allocation7 + $0x38] sm:$0xff] }
 0xb25   :  { %v4934_v29 = vadd.f32 %v1202_v23, %v1198_v26  ;;  %v1215_v23 = vld [vmem:[#allocation7 + $0x30] sm:$0xff] }
 0xb26   :  { %1208 = vst [vmem:[#allocation13 + $0x28] sm:$0xff] %v4932_v28 }
 0xb27   :  { %1207 = vst [vmem:[#allocation13 + $0x20] sm:$0xff] %v4934_v29  ;;  %v3854_v33 = vpack.c.bf16 %v4932_v28, %v4934_v29 }
 0xb29   :  { %3855 = vmatprep.subr.bf16.mxu1 %v3854_v33 }
 0xb2a   :  { %3857 = vmatpush3.bf16.msra.mxu1 %v3854_v33 }
 0xb2d   :  { %3398 = vmatmul.mubr.msk.f32.vlgmr.msra.gmra.mrb[14].mxu1 %vm164_vm0, %v4703_v14 }
 0xb2e   :  { %3404 = vmatprep.mubr.msk.f32.mxu1 %vm164_vm0, %v4693_v2 }
 0xc00   :  { %v3399_v5 = vpop.f32.mrb[14].mxu1 }
 0xc01   :  { %v1283_v7 = vpop.f32.mrb[15].mxu1 }
 0xc02   :  { %1357 = vmatmul.mubr.f32.vlgmr.msra.gmra.mrb[16].mxu0 %v1283_v7 }
 0xc03   :  { %1362 = vmatprep.mubr.f32.mxu0 %v4562_v53 }
 0xc06   :  { %1363 = vmatmul.mubr.f32.gmra.mrb[18].mxu0 %v3399_v5 }
 0xc07   :  { %3446 = vmatprep.mubr.msk.f32.mxu0 %vm164_vm0, %v4693_v2 }
 0xcd5   :  { %v1358_v38 = vpop.f32.mrb[16].mxu0 }
 0xcd6   :  { %v1359_v44 = vadd.f32 %v1358_v38, %v1210_v34  ;;  %v4947_v0 = vpop.f32.mrb[17].mxu0 }
 0xcd7   :  { %v1361_v12 = vadd.f32 %v4947_v0, %v1211_v9 }
 0xcd8   :  { %v3000_v46 = vmul.f32 -1.442695, %v1359_v44 }
 0xcd9   :  { %v1364_v47 = vpop.f32.mrb[18].mxu0  ;;  %v3002_v16 = vmul.f32 -1.442695, %v1361_v12 }
 0xcda   :  { %4286 = vpow2.f32 %v3000_v46  ;;  %v1365_v51 = vadd.f32 %v1364_v47, %v1212_v1  ;;  %v1366_v54 = vpop.f32.mrb[19].mxu0 }
 0xcdb   :  { %v1367_v11 = vadd.f32 %v1366_v54, %v1213_v41 }
 0xcdc   :  { %v3001_v56 = vmul.f32 -1.442695, %v1365_v51 }
 0xcdd   :  { %v3003_v13 = vmul.f32 -1.442695, %v1367_v11 }
 0xcde   :  { %4288 = vpow2.f32 %v3001_v56 }
 0xce4   :  { %v4287_v57 = vpop.eup %4286 }
 0xce5   :  { %v1375_v58 = vadd.f32 1.0, %v4287_v57 }
 0xce7   :  { %4290 = vrcp.f32 %v1375_v58 }
 0xce8   :  { %v4289_v60 = vpop.eup %4288 }
 0xce9   :  { %v1376_v61 = vadd.f32 1.0, %v4289_v60 }
 0xceb   :  { %4292 = vrcp.f32 %v1376_v61  ;;  %v4997_v61 = vld [vmem:[#allocation2 + $0x8] sm:$0xff] }
 0xcec   :  { %4294 = vpow2.f32 %v3003_v13 }
 0xced   :  { %4296 = vpow2.f32 %v3002_v16 }
 0xcf1   :  { %v4291_v2 = vpop.eup %4290 }
 0xcf2   :  { %v1393_v63 = vmul.f32 %v4291_v2, %v4934_v29 }
 0xcf5   :  { %v4293_v62 = vpop.eup %4292 }
 0xcf6   :  { %v1394_v4 = vmul.f32 %v4293_v62, %v4932_v28  ;;  %v4295_v17 = vpop.eup %4294  ;;  %v1559_v62 = vld [vmem:[#allocation5 + $0x80] sm:$0xff] }
 0xcf7   :  { %v4297_v20 = vpop.eup %4296  ;;  %v1388_v3 = vadd.f32 1.0, %v4295_v17 }
 0xcf8   :  { %v3890_v8 = vpack.c.bf16 %v1394_v4, %v1393_v63  ;;  %v1387_v59 = vadd.f32 1.0, %v4297_v20 }
 0xcf9   :  { %4298 = vrcp.f32 %v1388_v3 }
 0xcfa   :  { %3891 = vmatprep.subr.bf16.mxu1 %v3890_v8  ;;  %4300 = vrcp.f32 %v1387_v59 }
 0xcfb   :  { %3893 = vmatpush3.bf16.msra.mxu1 %v3890_v8 }
 0xcfc   :  { %3895 = vmatprep.subr.bf16.mxu1 %v4763_v22 }
 0xcfe   :  { %3405 = vmatmul.mubr.msk.f32.vlgmr.msra.gmra.mrb[16].mxu1 %vm164_vm0, %v4703_v14 }
 0xcff   :  { %3897 = vmatpush3.bf16.msra.mxu1 %v4763_v22 }
 0xd00   :  { %3899 = vmatprep.subr.bf16.mxu1 %v4766_v27 }
 0xd03   :  { %3901 = vmatpush3.bf16.msra.mxu1 %v4766_v27  ;;  %v4299_v34 = vpop.eup %4298 }
 0xd04   :  { %3903 = vmatprep.subr.bf16.mxu1 %v4772_v32  ;;  %v4301_v38 = vpop.eup %4300  ;;  %v1550_v44 = vsub.f32 1.0, %v4299_v34  ;;  %v1548_v51 = vmul.f32 %v4299_v34, %v4932_v28  ;;  %v5001_v28 = vld [vmem:[#allocation2] sm:$0xff]  ;;  %v1560_v34 = vld [vmem:[#allocation5 + $0x88] sm:$0xff] }
 0xd05   :  { %v1549_v1 = vsub.f32 1.0, %v4301_v38  ;;  %v1547_v56 = vmul.f32 %v4301_v38, %v4934_v29 }
 0xd07   :  { %3905 = vmatpush3.bf16.msra.mxu1 %v4772_v32 }
 0xd08   :  { %3907 = vmatprep.subr.bf16.mxu1 %v4776_v35 }
 0xd0b   :  { %3909 = vmatpush3.bf16.msra.mxu1 %v4776_v35 }
 0xd0c   :  { %3911 = vmatprep.subr.bf16.mxu1 %v4780_v40 }
 0xd0f   :  { %3913 = vmatpush3.bf16.msra.mxu1 %v4780_v40 }
 0xd10   :  { %3915 = vmatprep.subr.bf16.mxu1 %v4784_v45 }
 0xd13   :  { %3917 = vmatpush3.bf16.msra.mxu1 %v4784_v45 }
 0xd14   :  { %3919 = vmatprep.subr.bf16.mxu1 %v4788_v50 }
 0xd17   :  { %3921 = vmatpush3.bf16.msra.mxu1 %v4788_v50 }
 0xd18   :  { %3923 = vmatprep.subr.bf16.mxu1 %v4792_v55 }
 0xd1b   :  { %3925 = vmatpush3.bf16.msra.mxu1 %v4792_v55 }
 0xd1c   :  { %3931 = vmatprep.subr.bf16.mxu1 %v4699_v6 }
 0xdd1   :  { %v3406_v14 = vpop.f32.mrb[16].mxu1 }
 0xdd2   :  { %v1461_v39 = vpop.f32.mrb[17].mxu1 }
 0xdd3   :  { %3439 = vmatprep.mubr.f32.mxu1 %v1461_v39 }
 0xdd4   :  { %3440 = vmatmul.mubr.f32.vlgmr.msra.gmra.mrb[18].mxu1 %v3406_v14  ;;  %v1561_v14 = vld [vmem:[#allocation5 + $0x90] sm:$0xff] }
 0xdd5   :  { %3933 = vmatpush1.bf16.msra.mxu1 %v4701_v10  ;;  %1705 = vmatprep.mubr.f32.mxu1 %v4562_v53 }
 0xdd6   :  { %3935 = vmatprep.subr.bf16.mxu1 %v4706_v15 }
 0xdd9   :  { %3937 = vmatpush1.bf16.msra.mxu1 %v4709_v18 }
 0xdda   :  { %3939 = vmatprep.subr.bf16.mxu1 %v4712_v19 }
 0xddd   :  { %3941 = vmatpush1.bf16.msra.mxu1 %v4719_v24 }
 0xdde   :  { %3943 = vmatprep.subr.bf16.mxu1 %v4722_v25 }
 0xde1   :  { %3945 = vmatpush1.bf16.msra.mxu1 %v4725_v30 }
 0xde2   :  { %3947 = vmatprep.subr.bf16.mxu1 %v4728_v31 }
 0xde5   :  { %3949 = vmatpush1.bf16.msra.mxu1 %v4731_v36 }
 0xde6   :  { %3951 = vmatprep.subr.bf16.mxu1 %v4734_v37 }
 0xde9   :  { %3953 = vmatpush1.bf16.msra.mxu1 %v4737_v42 }
 0xdea   :  { %3955 = vmatprep.subr.bf16.mxu1 %v4740_v43 }
 0xded   :  { %3957 = vmatpush1.bf16.msra.mxu1 %v4743_v48 }
 0xdee   :  { %3959 = vmatprep.subr.bf16.mxu1 %v4746_v49 }
 0xdf1   :  { %3961 = vmatpush1.bf16.msra.mxu1 %v4749_v52 }
 0xea7   :  { %v3441_v26 = vpop.f32.mrb[18].mxu1 }
 0xea8   :  { %v1542_v33 = vadd.f32 %v3441_v26, %v1216_v21  ;;  %v1536_v5 = vpop.f32.mrb[19].mxu1 }
 0xea9   :  { %v1537_v7 = vadd.f32 %v1536_v5, %v1215_v23 }
 0xeaa   :  { %4302 = vtanh.f32 %v1542_v33 }
 0xeab   :  { %4304 = vtanh.f32 %v1537_v7  ;;  %v1562_v7 = vld [vmem:[#allocation5 + $0x98] sm:$0xff] }
 0xeb4   :  { %v4303_v0 = vpop.eup %4302 }
 0xeb5   :  { %v4305_v46 = vpop.eup %4304  ;;  %v1552_v47 = vmul.f32 %v4303_v0, %v1550_v44 }
 0xeb6   :  { %v1551_v54 = vmul.f32 %v4305_v46, %v1549_v1 }
 0xeb7   :  { %v4989_v57 = vadd.f32 %v1552_v47, %v1548_v51 }
 0xeb8   :  { %v4991_v58 = vadd.f32 %v1551_v54, %v1547_v56  ;;  %v1565_v56 = vld [vmem:[#allocation7 + $0x48] sm:$0xff] }
 0xeb9   :  { %1557 = vst [vmem:[#allocation13 + $0x38] sm:$0xff] %v4989_v57 }
 0xeba   :  { %1556 = vst [vmem:[#allocation13 + $0x30] sm:$0xff] %v4991_v58  ;;  %v3926_v60 = vpack.c.bf16 %v4989_v57, %v4991_v58 }
 0xebc   :  { %3927 = vmatprep.subr.bf16.mxu0 %v3926_v60 }
 0xebd   :  { %3929 = vmatpush3.bf16.msra.mxu0 %v3926_v60  ;;  %v1564_v60 = vld [vmem:[#allocation7 + $0x40] sm:$0xff] }
 0xec0   :  { %3447 = vmatmul.mubr.msk.f32.vlgmr.msra.gmra.mrb[20].mxu0 %vm164_vm0, %v4997_v61 }
 0xec1   :  { %3453 = vmatprep.mubr.msk.f32.mxu0 %vm164_vm0, %v5001_v28 }
 0xf93   :  { %v3448_v29 = vpop.f32.mrb[20].mxu0 }
 0xf94   :  { %v1632_v2 = vpop.f32.mrb[21].mxu0 }
 0xf95   :  { %1706 = vmatmul.mubr.f32.vlgmr.msra.gmra.mrb[20].mxu1 %v1632_v2 }
 0xf96   :  { %1711 = vmatprep.mubr.f32.mxu1 %v4562_v53 }
 0xf99   :  { %1712 = vmatmul.mubr.f32.gmra.mrb[22].mxu1 %v3448_v29 }
 0xf9a   :  { %3495 = vmatprep.mubr.msk.f32.mxu1 %vm164_vm0, %v5001_v28 }
0x1068   :  { %v1707_v63 = vpop.f32.mrb[20].mxu1 }
0x1069   :  { %v1708_v4 = vadd.f32 %v1707_v63, %v1559_v62  ;;  %v5008_v8 = vpop.f32.mrb[21].mxu1 }
0x106a   :  { %v1710_v44 = vadd.f32 %v5008_v8, %v1560_v34 }
0x106b   :  { %v3008_v39 = vmul.f32 -1.442695, %v1708_v4 }
0x106c   :  { %v1713_v41 = vpop.f32.mrb[22].mxu1  ;;  %v3010_v1 = vmul.f32 -1.442695, %v1710_v44 }
0x106d   :  { %4306 = vpow2.f32 %v3008_v39  ;;  %v1714_v9 = vadd.f32 %v1713_v41, %v1561_v14  ;;  %v1715_v11 = vpop.f32.mrb[23].mxu1 }
0x106e   :  { %v1716_v38 = vadd.f32 %v1715_v11, %v1562_v7 }
0x106f   :  { %v3009_v12 = vmul.f32 -1.442695, %v1714_v9 }
0x1070   :  { %v3011_v0 = vmul.f32 -1.442695, %v1716_v38 }
0x1071   :  { %4308 = vpow2.f32 %v3009_v12 }
0x1077   :  { %v4307_v13 = vpop.eup %4306 }
0x1078   :  { %v1724_v16 = vadd.f32 1.0, %v4307_v13 }
0x107a   :  { %4310 = vrcp.f32 %v1724_v16 }
0x107b   :  { %v4309_v17 = vpop.eup %4308 }
0x107c   :  { %v1725_v20 = vadd.f32 1.0, %v4309_v17 }
0x107e   :  { %4312 = vrcp.f32 %v1725_v20 }
0x107f   :  { %4314 = vpow2.f32 %v3011_v0 }
0x1080   :  { %4316 = vpow2.f32 %v3010_v1 }
0x1084   :  { %v4311_v3 = vpop.eup %4310 }
0x1085   :  { %v1742_v21 = vmul.f32 %v4311_v3, %v4991_v58 }
0x1088   :  { %v4313_v59 = vpop.eup %4312 }
0x1089   :  { %v1743_v23 = vmul.f32 %v4313_v59, %v4989_v57  ;;  %v4315_v46 = vpop.eup %4314  ;;  %v1908_v59 = vld [vmem:[#allocation5 + $0xa0] sm:$0xff] }
0x108a   :  { %v4317_v47 = vpop.eup %4316  ;;  %v1737_v51 = vadd.f32 1.0, %v4315_v46 }
0x108b   :  { %v3962_v26 = vpack.c.bf16 %v1743_v23, %v1742_v21  ;;  %v1736_v54 = vadd.f32 1.0, %v4317_v47 }
0x108c   :  { %4318 = vrcp.f32 %v1737_v51 }
0x108d   :  { %3963 = vmatprep.subr.bf16.mxu0 %v3962_v26  ;;  %4320 = vrcp.f32 %v1736_v54 }
0x108e   :  { %3965 = vmatpush3.bf16.msra.mxu0 %v3962_v26 }
0x108f   :  { %3967 = vmatprep.subr.bf16.mxu0 %v4763_v22 }
0x1091   :  { %3454 = vmatmul.mubr.msk.f32.vlgmr.msra.gmra.mrb[22].mxu0 %vm164_vm0, %v4997_v61 }
0x1092   :  { %3969 = vmatpush3.bf16.msra.mxu0 %v4763_v22 }
0x1093   :  { %3971 = vmatprep.subr.bf16.mxu0 %v4766_v27 }
0x1096   :  { %3973 = vmatpush3.bf16.msra.mxu0 %v4766_v27  ;;  %v4319_v4 = vpop.eup %4318 }
0x1097   :  { %3975 = vmatprep.subr.bf16.mxu0 %v4772_v32  ;;  %v4321_v8 = vpop.eup %4320  ;;  %v1899_v14 = vsub.f32 1.0, %v4319_v4  ;;  %v1897_v12 = vmul.f32 %v4319_v4, %v4989_v57  ;;  %v1909_v4 = vld [vmem:[#allocation5 + $0xa8] sm:$0xff] }
0x1098   :  { %v1898_v41 = vsub.f32 1.0, %v4321_v8  ;;  %v1896_v16 = vmul.f32 %v4321_v8, %v4991_v58 }
0x109a   :  { %3977 = vmatpush3.bf16.msra.mxu0 %v4772_v32 }
0x109b   :  { %3979 = vmatprep.subr.bf16.mxu0 %v4776_v35 }
0x109e   :  { %3981 = vmatpush3.bf16.msra.mxu0 %v4776_v35 }
0x109f   :  { %3983 = vmatprep.subr.bf16.mxu0 %v4780_v40 }
0x10a2   :  { %3985 = vmatpush3.bf16.msra.mxu0 %v4780_v40 }
0x10a3   :  { %3987 = vmatprep.subr.bf16.mxu0 %v4784_v45 }
0x10a6   :  { %3989 = vmatpush3.bf16.msra.mxu0 %v4784_v45 }
0x10a7   :  { %3991 = vmatprep.subr.bf16.mxu0 %v4788_v50 }
0x10aa   :  { %3993 = vmatpush3.bf16.msra.mxu0 %v4788_v50 }
0x10ab   :  { %3995 = vmatprep.subr.bf16.mxu0 %v4792_v55 }
0x10ae   :  { %3997 = vmatpush3.bf16.msra.mxu0 %v4792_v55 }
0x10af   :  { %4003 = vmatprep.subr.bf16.mxu0 %v4699_v6 }
0x1164   :  { %v3455_v33 = vpop.f32.mrb[22].mxu0 }
0x1165   :  { %v1810_v5 = vpop.f32.mrb[23].mxu0 }
0x1166   :  { %3488 = vmatprep.mubr.f32.mxu0 %v1810_v5 }
0x1167   :  { %3489 = vmatmul.mubr.f32.vlgmr.msra.gmra.mrb[24].mxu0 %v3455_v33  ;;  %v1910_v33 = vld [vmem:[#allocation5 + $0xb0] sm:$0xff] }
0x1168   :  { %4005 = vmatpush1.bf16.msra.mxu0 %v4701_v10  ;;  %2054 = vmatprep.mubr.f32.mxu0 %v4562_v53 }
0x1169   :  { %4007 = vmatprep.subr.bf16.mxu0 %v4706_v15 }
0x116c   :  { %4009 = vmatpush1.bf16.msra.mxu0 %v4709_v18 }
0x116d   :  { %4011 = vmatprep.subr.bf16.mxu0 %v4712_v19 }
0x1170   :  { %4013 = vmatpush1.bf16.msra.mxu0 %v4719_v24 }
0x1171   :  { %4015 = vmatprep.subr.bf16.mxu0 %v4722_v25 }
0x1174   :  { %4017 = vmatpush1.bf16.msra.mxu0 %v4725_v30 }
0x1175   :  { %4019 = vmatprep.subr.bf16.mxu0 %v4728_v31 }
0x1178   :  { %4021 = vmatpush1.bf16.msra.mxu0 %v4731_v36 }
0x1179   :  { %4023 = vmatprep.subr.bf16.mxu0 %v4734_v37 }
0x117c   :  { %4025 = vmatpush1.bf16.msra.mxu0 %v4737_v42 }
0x117d   :  { %4027 = vmatprep.subr.bf16.mxu0 %v4740_v43 }
0x1180   :  { %4029 = vmatpush1.bf16.msra.mxu0 %v4743_v48 }
0x1181   :  { %4031 = vmatprep.subr.bf16.mxu0 %v4746_v49 }
0x1184   :  { %4033 = vmatpush1.bf16.msra.mxu0 %v4749_v52 }
0x123a   :  { %v3490_v29 = vpop.f32.mrb[24].mxu0 }
0x123b   :  { %v1891_v2 = vadd.f32 %v3490_v29, %v1565_v56  ;;  %v1885_v62 = vpop.f32.mrb[25].mxu0 }
0x123c   :  { %v1886_v63 = vadd.f32 %v1885_v62, %v1564_v60 }
0x123d   :  { %4322 = vtanh.f32 %v1891_v2 }
0x123e   :  { %4324 = vtanh.f32 %v1886_v63  ;;  %v1911_v63 = vld [vmem:[#allocation5 + $0xb8] sm:$0xff] }
0x1247   :  { %v4323_v39 = vpop.eup %4322 }
0x1248   :  { %v4325_v9 = vpop.eup %4324  ;;  %v1901_v11 = vmul.f32 %v4323_v39, %v1899_v14 }
0x1249   :  { %v1900_v13 = vmul.f32 %v4325_v9, %v1898_v41 }
0x124a   :  { %v5050_v17 = vadd.f32 %v1901_v11, %v1897_v12 }
0x124b   :  { %v5052_v20 = vadd.f32 %v1900_v13, %v1896_v16  ;;  %v1914_v16 = vld [vmem:[#allocation7 + $0x58] sm:$0xff] }
0x124c   :  { %1906 = vst [vmem:[#allocation13 + $0x48] sm:$0xff] %v5050_v17 }
0x124d   :  { %1905 = vst [vmem:[#allocation13 + $0x40] sm:$0xff] %v5052_v20  ;;  %v3998_v3 = vpack.c.bf16 %v5050_v17, %v5052_v20 }
0x124f   :  { %3999 = vmatprep.subr.bf16.mxu1 %v3998_v3 }
0x1250   :  { %4001 = vmatpush3.bf16.msra.mxu1 %v3998_v3  ;;  %v1913_v3 = vld [vmem:[#allocation7 + $0x50] sm:$0xff] }
0x1253   :  { %3496 = vmatmul.mubr.msk.f32.vlgmr.msra.gmra.mrb[24].mxu1 %vm164_vm0, %v4997_v61 }
0x1254   :  { %3502 = vmatprep.mubr.msk.f32.mxu1 %vm164_vm0, %v5001_v28 }
0x1326   :  { %v3497_v57 = vpop.f32.mrb[24].mxu1 }
0x1327   :  { %v1981_v58 = vpop.f32.mrb[25].mxu1 }
0x1328   :  { %2055 = vmatmul.mubr.f32.vlgmr.msra.gmra.mrb[26].mxu0 %v1981_v58 }
0x1329   :  { %2060 = vmatprep.mubr.f32.mxu0 %v4562_v53 }
0x132c   :  { %2061 = vmatmul.mubr.f32.gmra.mrb[28].mxu0 %v3497_v57 }
0x132d   :  { %3544 = vmatprep.mubr.msk.f32.mxu0 %vm164_vm0, %v5001_v28 }
0x13fb   :  { %v2056_v21 = vpop.f32.mrb[26].mxu0 }
0x13fc   :  { %v2057_v23 = vadd.f32 %v2056_v21, %v1908_v59  ;;  %v5065_v26 = vpop.f32.mrb[27].mxu0 }
0x13fd   :  { %v2059_v14 = vadd.f32 %v5065_v26, %v1909_v4 }
0x13fe   :  { %v3016_v5 = vmul.f32 -1.442695, %v2057_v23 }
0x13ff   :  { %v2062_v7 = vpop.f32.mrb[28].mxu0  ;;  %v3018_v41 = vmul.f32 -1.442695, %v2059_v14 }
0x1400   :  { %4326 = vpow2.f32 %v3016_v5  ;;  %v2063_v34 = vadd.f32 %v2062_v7, %v1910_v33  ;;  %v2064_v38 = vpop.f32.mrb[29].mxu0 }
0x1401   :  { %v2065_v8 = vadd.f32 %v2064_v38, %v1911_v63 }
0x1402   :  { %v3017_v44 = vmul.f32 -1.442695, %v2063_v34 }
0x1403   :  { %v3019_v39 = vmul.f32 -1.442695, %v2065_v8 }
0x1404   :  { %4328 = vpow2.f32 %v3017_v44 }
0x140a   :  { %v4327_v0 = vpop.eup %4326 }
0x140b   :  { %v2073_v1 = vadd.f32 1.0, %v4327_v0 }
0x140d   :  { %4330 = vrcp.f32 %v2073_v1 }
0x140e   :  { %v4329_v46 = vpop.eup %4328 }
0x140f   :  { %v2074_v47 = vadd.f32 1.0, %v4329_v46 }
0x1411   :  { %4332 = vrcp.f32 %v2074_v47 }
0x1412   :  { %4334 = vpow2.f32 %v3019_v39 }
0x1413   :  { %4336 = vpow2.f32 %v3018_v41 }
0x1417   :  { %v4331_v51 = vpop.eup %4330 }
0x1418   :  { %v2091_v56 = vmul.f32 %v4331_v51, %v5052_v20 }
0x141b   :  { %v4333_v54 = vpop.eup %4332 }
0x141c   :  { %v2092_v60 = vmul.f32 %v4333_v54, %v5050_v17  ;;  %v4335_v9 = vpop.eup %4334  ;;  %v2257_v54 = vld [vmem:[#allocation5 + $0xc0] sm:$0xff] }
0x141d   :  { %v4337_v11 = vpop.eup %4336  ;;  %v2086_v12 = vadd.f32 1.0, %v4335_v9 }
0x141e   :  { %v4034_v29 = vpack.c.bf16 %v2092_v60, %v2091_v56  ;;  %v2085_v13 = vadd.f32 1.0, %v4337_v11 }
0x141f   :  { %4338 = vrcp.f32 %v2086_v12 }
0x1420   :  { %4035 = vmatprep.subr.bf16.mxu1 %v4034_v29  ;;  %4340 = vrcp.f32 %v2085_v13 }
0x1421   :  { %4037 = vmatpush3.bf16.msra.mxu1 %v4034_v29 }
0x1422   :  { %4039 = vmatprep.subr.bf16.mxu1 %v4763_v22 }
0x1424   :  { %3503 = vmatmul.mubr.msk.f32.vlgmr.msra.gmra.mrb[26].mxu1 %vm164_vm0, %v4997_v61 }
0x1425   :  { %4041 = vmatpush3.bf16.msra.mxu1 %v4763_v22 }
0x1426   :  { %4043 = vmatprep.subr.bf16.mxu1 %v4766_v27 }
0x1429   :  { %4045 = vmatpush3.bf16.msra.mxu1 %v4766_v27  ;;  %v4339_v23 = vpop.eup %4338 }
0x142a   :  { %4047 = vmatprep.subr.bf16.mxu1 %v4772_v32  ;;  %v4341_v26 = vpop.eup %4340  ;;  %v2248_v33 = vsub.f32 1.0, %v4339_v23  ;;  %v2246_v44 = vmul.f32 %v4339_v23, %v5050_v17 }
0x142b   :  { %v2247_v7 = vsub.f32 1.0, %v4341_v26  ;;  %v2245_v1 = vmul.f32 %v4341_v26, %v5052_v20 }
0x142d   :  { %4049 = vmatpush3.bf16.msra.mxu1 %v4772_v32 }
0x142e   :  { %4051 = vmatprep.subr.bf16.mxu1 %v4776_v35 }
0x1431   :  { %4053 = vmatpush3.bf16.msra.mxu1 %v4776_v35 }
0x1432   :  { %4055 = vmatprep.subr.bf16.mxu1 %v4780_v40 }
0x1435   :  { %4057 = vmatpush3.bf16.msra.mxu1 %v4780_v40 }
0x1436   :  { %4059 = vmatprep.subr.bf16.mxu1 %v4784_v45 }
0x1439   :  { %4061 = vmatpush3.bf16.msra.mxu1 %v4784_v45 }
0x143a   :  { %4063 = vmatprep.subr.bf16.mxu1 %v4788_v50 }
0x143d   :  { %4065 = vmatpush3.bf16.msra.mxu1 %v4788_v50 }
0x143e   :  { %4067 = vmatprep.subr.bf16.mxu1 %v4792_v55 }
0x1441   :  { %4069 = vmatpush3.bf16.msra.mxu1 %v4792_v55 }
0x1442   :  { %4075 = vmatprep.subr.bf16.mxu1 %v4699_v6 }
0x14f7   :  { %v3504_v2 = vpop.f32.mrb[26].mxu1 }
0x14f8   :  { %v2159_v62 = vpop.f32.mrb[27].mxu1 }
0x14f9   :  { %3537 = vmatprep.mubr.f32.mxu1 %v2159_v62 }
0x14fa   :  { %3538 = vmatmul.mubr.f32.vlgmr.msra.gmra.mrb[28].mxu1 %v3504_v2  ;;  %v2259_v2 = vld [vmem:[#allocation5 + $0xd0] sm:$0xff] }
0x14fb   :  { %4077 = vmatpush1.bf16.msra.mxu1 %v4701_v10  ;;  %2403 = vmatprep.mubr.f32.mxu1 %v4562_v53 }
0x14fc   :  { %4079 = vmatprep.subr.bf16.mxu1 %v4706_v15 }
0x14ff   :  { %4081 = vmatpush1.bf16.msra.mxu1 %v4709_v18 }
0x1500   :  { %4083 = vmatprep.subr.bf16.mxu1 %v4712_v19 }
0x1503   :  { %4085 = vmatpush1.bf16.msra.mxu1 %v4719_v24 }
0x1504   :  { %4087 = vmatprep.subr.bf16.mxu1 %v4722_v25 }
0x1507   :  { %4089 = vmatpush1.bf16.msra.mxu1 %v4725_v30 }
0x1508   :  { %4091 = vmatprep.subr.bf16.mxu1 %v4728_v31 }
0x150b   :  { %4093 = vmatpush1.bf16.msra.mxu1 %v4731_v36 }
0x150c   :  { %4095 = vmatprep.subr.bf16.mxu1 %v4734_v37 }
0x150f   :  { %4097 = vmatpush1.bf16.msra.mxu1 %v4737_v42 }
0x1510   :  { %4099 = vmatprep.subr.bf16.mxu1 %v4740_v43 }
0x1513   :  { %4101 = vmatpush1.bf16.msra.mxu1 %v4743_v48 }
0x1514   :  { %4103 = vmatprep.subr.bf16.mxu1 %v4746_v49 }
0x1517   :  { %4105 = vmatpush1.bf16.msra.mxu1 %v4749_v52 }
0x15cd   :  { %v3539_v57 = vpop.f32.mrb[28].mxu1 }
0x15ce   :  { %v2240_v58 = vadd.f32 %v3539_v57, %v1914_v16  ;;  %v2234_v59 = vpop.f32.mrb[29].mxu1 }
0x15cf   :  { %v2235_v21 = vadd.f32 %v2234_v59, %v1913_v3 }
0x15d0   :  { %4342 = vtanh.f32 %v2240_v58 }
0x15d1   :  { %4344 = vtanh.f32 %v2235_v21 }
0x15da   :  { %v4343_v5 = vpop.eup %4342 }
0x15db   :  { %v4345_v34 = vpop.eup %4344  ;;  %v2250_v38 = vmul.f32 %v4343_v5, %v2248_v33 }
0x15dc   :  { %v2249_v0 = vmul.f32 %v4345_v34, %v2247_v7 }
0x15dd   :  { %v5107_v46 = vadd.f32 %v2250_v38, %v2246_v44 }
0x15de   :  { %v5109_v47 = vadd.f32 %v2249_v0, %v2245_v1 }
0x15df   :  { %2255 = vst [vmem:[#allocation13 + $0x58] sm:$0xff] %v5107_v46 }
0x15e0   :  { %2254 = vst [vmem:[#allocation13 + $0x50] sm:$0xff] %v5109_v47  ;;  %v4070_v51 = vpack.c.bf16 %v5107_v46, %v5109_v47 }
0x15e2   :  { %4071 = vmatprep.subr.bf16.mxu0 %v4070_v51 }
0x15e3   :  { %4073 = vmatpush3.bf16.msra.mxu0 %v4070_v51 }
0x15e6   :  { %3545 = vmatmul.mubr.msk.f32.vlgmr.msra.gmra.mrb[30].mxu0 %vm164_vm0, %v4997_v61 }
0x15e7   :  { %3551 = vmatprep.mubr.msk.f32.mxu0 %vm164_vm0, %v5001_v28 }
0x16b9   :  { %v3546_v17 = vpop.f32.mrb[30].mxu0 }
0x16ba   :  { %v2330_v20 = vpop.f32.mrb[31].mxu0 }
0x16bb   :  { %2404 = vmatmul.mubr.f32.vlgmr.msra.gmra.mrb[30].mxu1 %v2330_v20  ;;  %v2606_v20 = vld [vmem:[#allocation5 + $0xe0] sm:$0xff] }
0x16bc   :  { %2409 = vmatprep.mubr.f32.mxu1 %v4562_v53 }
0x16bf   :  { %2410 = vmatmul.mubr.f32.gmra.mrb[32].mxu1 %v3546_v17 }
0x16c0   :  { %3593 = vmatprep.mubr.msk.f32.mxu1 %vm164_vm0, %v5001_v28 }
0x178e   :  { %v2405_v56 = vpop.f32.mrb[30].mxu1 }
0x178f   :  { %v2406_v60 = vadd.f32 %v2405_v56, %v2257_v54  ;;  %v5122_v29 = vpop.f32.mrb[31].mxu1 }
0x1791   :  { %v3024_v62 = vmul.f32 -1.442695, %v2406_v60 }
0x1792   :  { %v2411_v63 = vpop.f32.mrb[32].mxu1 }
0x1793   :  { %4346 = vpow2.f32 %v3024_v62  ;;  %v2412_v4 = vadd.f32 %v2411_v63, %v2259_v2  ;;  %v2413_v8 = vpop.f32.mrb[33].mxu1 }
0x1795   :  { %v3025_v14 = vmul.f32 -1.442695, %v2412_v4 }
0x1797   :  { %4348 = vpow2.f32 %v3025_v14 }
0x179d   :  { %v4347_v39 = vpop.eup %4346 }
0x179e   :  { %v2422_v41 = vadd.f32 1.0, %v4347_v39 }
0x17a0   :  { %4350 = vrcp.f32 %v2422_v41 }
0x17a1   :  { %v4349_v9 = vpop.eup %4348 }
0x17a2   :  { %v2423_v11 = vadd.f32 1.0, %v4349_v9 }
0x17a4   :  { %4352 = vrcp.f32 %v2423_v11 }
0x17aa   :  { %v4351_v12 = vpop.eup %4350 }
0x17ab   :  { %v2440_v16 = vmul.f32 %v4351_v12, %v5109_v47 }
0x17ae   :  { %v4353_v13 = vpop.eup %4352 }
0x17af   :  { %v2441_v3 = vmul.f32 %v4353_v13, %v5107_v46 }
0x17b1   :  { %v4106_v57 = vpack.c.bf16 %v2441_v3, %v2440_v16 }
0x17b3   :  { %4107 = vmatprep.subr.bf16.mxu0 %v4106_v57 }
0x17b4   :  { %4109 = vmatpush3.bf16.msra.mxu0 %v4106_v57 }
0x17b5   :  { %4111 = vmatprep.subr.bf16.mxu0 %v4763_v22 }
0x17b7   :  { %3552 = vmatmul.mubr.msk.f32.vlgmr.msra.gmra.mrb[32].mxu0 %vm164_vm0, %v4997_v61 }
0x17b8   :  { %4113 = vmatpush3.bf16.msra.mxu0 %v4763_v22 }
0x17b9   :  { %4115 = vmatprep.subr.bf16.mxu0 %v4766_v27 }
0x17bc   :  { %4117 = vmatpush3.bf16.msra.mxu0 %v4766_v27 }
0x17bd   :  { %4119 = vmatprep.subr.bf16.mxu0 %v4772_v32 }
0x17c0   :  { %4121 = vmatpush3.bf16.msra.mxu0 %v4772_v32 }
0x17c1   :  { %4123 = vmatprep.subr.bf16.mxu0 %v4776_v35 }
0x17c4   :  { %4125 = vmatpush3.bf16.msra.mxu0 %v4776_v35 }
0x17c5   :  { %4127 = vmatprep.subr.bf16.mxu0 %v4780_v40 }
0x17c8   :  { %4129 = vmatpush3.bf16.msra.mxu0 %v4780_v40 }
0x17c9   :  { %4131 = vmatprep.subr.bf16.mxu0 %v4784_v45 }
0x17cc   :  { %4133 = vmatpush3.bf16.msra.mxu0 %v4784_v45 }
0x17cd   :  { %4135 = vmatprep.subr.bf16.mxu0 %v4788_v50 }
0x17d0   :  { %4137 = vmatpush3.bf16.msra.mxu0 %v4788_v50 }
0x17d1   :  { %4139 = vmatprep.subr.bf16.mxu0 %v4792_v55 }
0x17d4   :  { %4141 = vmatpush3.bf16.msra.mxu0 %v4792_v55 }
0x17d5   :  { %4147 = vmatprep.subr.bf16.mxu0 %v4699_v6  ;;  %v2260_v6 = vld [vmem:[#allocation5 + $0xd8] sm:$0xff] }
0x188a   :  { %v3553_v58 = vpop.f32.mrb[32].mxu0 }
0x188b   :  { %v2508_v59 = vpop.f32.mrb[33].mxu0 }
0x188c   :  { %3586 = vmatprep.mubr.f32.mxu0 %v2508_v59  ;;  %v2612_v59 = vld [vmem:[#allocation7 + $0x78] sm:$0xff] }
0x188d   :  { %3587 = vmatmul.mubr.f32.vlgmr.msra.gmra.mrb[34].mxu0 %v3553_v58 }
0x188e   :  { %4149 = vmatpush1.bf16.msra.mxu0 %v4701_v10  ;;  %2752 = vmatprep.mubr.f32.mxu0 %v4562_v53  ;;  %v2258_v10 = vld [vmem:[#allocation5 + $0xc8] sm:$0xff] }
0x188f   :  { %4151 = vmatprep.subr.bf16.mxu0 %v4706_v15  ;;  %v2414_v15 = vadd.f32 %v2413_v8, %v2260_v6  ;;  %v2611_v6 = vld [vmem:[#allocation7 + $0x70] sm:$0xff] }
0x1892   :  { %4153 = vmatpush1.bf16.msra.mxu0 %v4709_v18  ;;  %v2408_v18 = vadd.f32 %v5122_v29, %v2258_v10  ;;  %v2608_v29 = vld [vmem:[#allocation5 + $0xf0] sm:$0xff] }
0x1893   :  { %4155 = vmatprep.subr.bf16.mxu0 %v4712_v19  ;;  %v3027_v19 = vmul.f32 -1.442695, %v2414_v15 }
0x1895   :  { %4354 = vpow2.f32 %v3027_v19 }
0x1896   :  { %4157 = vmatpush1.bf16.msra.mxu0 %v4719_v24  ;;  %v3026_v24 = vmul.f32 -1.442695, %v2408_v18 }
0x1897   :  { %4159 = vmatprep.subr.bf16.mxu0 %v4722_v25 }
0x1898   :  { %4356 = vpow2.f32 %v3026_v24 }
0x189a   :  { %4161 = vmatpush1.bf16.msra.mxu0 %v4725_v30 }
0x189b   :  { %4163 = vmatprep.subr.bf16.mxu0 %v4728_v31 }
0x189e   :  { %4165 = vmatpush1.bf16.msra.mxu0 %v4731_v36 }
0x189f   :  { %4167 = vmatprep.subr.bf16.mxu0 %v4734_v37  ;;  %v4355_v25 = vpop.eup %4354  ;;  %v2263_v37 = vld [vmem:[#allocation7 + $0x68] sm:$0xff] }
0x18a0   :  { %v2435_v31 = vadd.f32 1.0, %v4355_v25 }
0x18a2   :  { %4169 = vmatpush1.bf16.msra.mxu0 %v4737_v42  ;;  %v4357_v30 = vpop.eup %4356  ;;  %4358 = vrcp.f32 %v2435_v31  ;;  %v2262_v42 = vld [vmem:[#allocation7 + $0x60] sm:$0xff] }
0x18a3   :  { %4171 = vmatprep.subr.bf16.mxu0 %v4740_v43  ;;  %v2434_v36 = vadd.f32 1.0, %v4357_v30 }
0x18a5   :  { %4360 = vrcp.f32 %v2434_v36 }
0x18a6   :  { %4173 = vmatpush1.bf16.msra.mxu0 %v4743_v48 }
0x18a7   :  { %4175 = vmatprep.subr.bf16.mxu0 %v4746_v49 }
0x18aa   :  { %4177 = vmatpush1.bf16.msra.mxu0 %v4749_v52 }
0x18ac   :  { %v4359_v21 = vpop.eup %4358 }
0x18ad   :  { %v2597_v26 = vsub.f32 1.0, %v4359_v21  ;;  %v2595_v38 = vmul.f32 %v4359_v21, %v5107_v46 }
0x18af   :  { %v4361_v23 = vpop.eup %4360 }
0x18b0   :  { %v2596_v5 = vsub.f32 1.0, %v4361_v23  ;;  %v2594_v0 = vmul.f32 %v4361_v23, %v5109_v47 }
0x1960   :  { %v3588_v43 = vpop.f32.mrb[34].mxu0 }
0x1961   :  { %v2589_v48 = vadd.f32 %v3588_v43, %v2263_v37  ;;  %v2583_v49 = vpop.f32.mrb[35].mxu0 }
0x1962   :  { %v2584_v52 = vadd.f32 %v2583_v49, %v2262_v42 }
0x1963   :  { %4362 = vtanh.f32 %v2589_v48 }
0x1964   :  { %4364 = vtanh.f32 %v2584_v52 }
0x196d   :  { %v4363_v33 = vpop.eup %4362 }
0x196e   :  { %v4365_v7 = vpop.eup %4364  ;;  %v2599_v34 = vmul.f32 %v4363_v33, %v2597_v26 }
0x196f   :  { %v2598_v44 = vmul.f32 %v4365_v7, %v2596_v5 }
0x1970   :  { %v5164_v1 = vadd.f32 %v2599_v34, %v2595_v38 }
0x1971   :  { %v5166_v51 = vadd.f32 %v2598_v44, %v2594_v0 }
0x1972   :  { %2604 = vst [vmem:[#allocation13 + $0x68] sm:$0xff] %v5164_v1 }
0x1973   :  { %2603 = vst [vmem:[#allocation13 + $0x60] sm:$0xff] %v5166_v51  ;;  %v4142_v17 = vpack.c.bf16 %v5164_v1, %v5166_v51 }
0x1975   :  { %4143 = vmatprep.subr.bf16.mxu1 %v4142_v17 }
0x1976   :  { %4145 = vmatpush3.bf16.msra.mxu1 %v4142_v17 }
0x1979   :  { %3594 = vmatmul.mubr.msk.f32.vlgmr.msra.gmra.mrb[34].mxu1 %vm164_vm0, %v4997_v61 }
0x197a   :  { %3600 = vmatprep.mubr.msk.f32.mxu1 %vm164_vm0, %v5001_v28 }
0x1a4c   :  { %v3595_v46 = vpop.f32.mrb[34].mxu1 }
0x1a4d   :  { %v2679_v47 = vpop.f32.mrb[35].mxu1 }
0x1a4e   :  { %2753 = vmatmul.mubr.f32.vlgmr.msra.gmra.mrb[36].mxu0 %v2679_v47 }
0x1a4f   :  { %2758 = vmatprep.mubr.f32.mxu0 %v4562_v53 }
0x1a52   :  { %2759 = vmatmul.mubr.f32.gmra.mrb[38].mxu0 %v3595_v46 }
0x1b21   :  { %v2754_v54 = vpop.f32.mrb[36].mxu0 }
0x1b22   :  { %v2755_v56 = vadd.f32 %v2754_v54, %v2606_v20  ;;  %v2756_v60 = vpop.f32.mrb[37].mxu0 }
0x1b24   :  { %v3032_v2 = vmul.f32 -1.442695, %v2755_v56 }
0x1b25   :  { %v2760_v62 = vpop.f32.mrb[38].mxu0 }
0x1b26   :  { %4366 = vpow2.f32 %v3032_v2  ;;  %v2761_v63 = vadd.f32 %v2760_v62, %v2608_v29  ;;  %v2762_v4 = vpop.f32.mrb[39].mxu0 }
0x1b28   :  { %v3033_v8 = vmul.f32 -1.442695, %v2761_v63 }
0x1b2a   :  { %4368 = vpow2.f32 %v3033_v8 }
0x1b30   :  { %v4367_v14 = vpop.eup %4366 }
0x1b31   :  { %v2771_v28 = vadd.f32 1.0, %v4367_v14 }
0x1b33   :  { %4370 = vrcp.f32 %v2771_v28 }
0x1b34   :  { %v4369_v39 = vpop.eup %4368 }
0x1b35   :  { %v2772_v41 = vadd.f32 1.0, %v4369_v39 }
0x1b37   :  { %4372 = vrcp.f32 %v2772_v41 }
0x1b3d   :  { %v4371_v53 = vpop.eup %4370 }
0x1b3e   :  { %v2789_v11 = vmul.f32 %v4371_v53, %v5166_v51 }
0x1b41   :  { %v4373_v9 = vpop.eup %4372 }
0x1b42   :  { %v2790_v12 = vmul.f32 %v4373_v9, %v5164_v1 }
0x1b44   :  { %v4178_v13 = vpack.c.bf16 %v2790_v12, %v2789_v11 }
0x1b46   :  { %4179 = vmatprep.subr.bf16.mxu1 %v4178_v13 }
0x1b47   :  { %4181 = vmatpush3.bf16.msra.mxu1 %v4178_v13 }
0x1b48   :  { %4183 = vmatprep.subr.bf16.mxu1 %v4763_v22 }
0x1b4a   :  { %3601 = vmatmul.mubr.msk.f32.vlgmr.msra.gmra.mrb[36].mxu1 %vm164_vm0, %v4997_v61 }
0x1b4b   :  { %4185 = vmatpush3.bf16.msra.mxu1 %v4763_v22 }
0x1b4c   :  { %4187 = vmatprep.subr.bf16.mxu1 %v4766_v27 }
0x1b4f   :  { %4189 = vmatpush3.bf16.msra.mxu1 %v4766_v27 }
0x1b50   :  { %4191 = vmatprep.subr.bf16.mxu1 %v4772_v32 }
0x1b53   :  { %4193 = vmatpush3.bf16.msra.mxu1 %v4772_v32  ;;  %v2609_v32 = vld [vmem:[#allocation5 + $0xf8] sm:$0xff] }
0x1b54   :  { %4195 = vmatprep.subr.bf16.mxu1 %v4776_v35  ;;  %v2763_v61 = vadd.f32 %v2762_v4, %v2609_v32 }
0x1b56   :  { %v3035_v16 = vmul.f32 -1.442695, %v2763_v61 }
0x1b57   :  { %4197 = vmatpush3.bf16.msra.mxu1 %v4776_v35  ;;  %v2607_v35 = vld [vmem:[#allocation5 + $0xe8] sm:$0xff] }
0x1b58   :  { %4199 = vmatprep.subr.bf16.mxu1 %v4780_v40  ;;  %4374 = vpow2.f32 %v3035_v16 }
0x1b5b   :  { %4201 = vmatpush3.bf16.msra.mxu1 %v4780_v40  ;;  %v2757_v40 = vadd.f32 %v2756_v60, %v2607_v35 }
0x1b5c   :  { %4203 = vmatprep.subr.bf16.mxu1 %v4784_v45 }
0x1b5d   :  { %v3034_v3 = vmul.f32 -1.442695, %v2757_v40 }
0x1b5f   :  { %4205 = vmatpush3.bf16.msra.mxu1 %v4784_v45  ;;  %4376 = vpow2.f32 %v3034_v3 }
0x1b60   :  { %4207 = vmatprep.subr.bf16.mxu1 %v4788_v50 }
0x1b62   :  { %v4375_v45 = vpop.eup %4374 }
0x1b63   :  { %4209 = vmatpush3.bf16.msra.mxu1 %v4788_v50  ;;  %v2784_v58 = vadd.f32 1.0, %v4375_v45 }
0x1b64   :  { %4211 = vmatprep.subr.bf16.mxu1 %v4792_v55 }
0x1b65   :  { %4378 = vrcp.f32 %v2784_v58 }
0x1b67   :  { %4213 = vmatpush3.bf16.msra.mxu1 %v4792_v55 }
0x1b69   :  { %v4377_v57 = vpop.eup %4376 }
0x1b6a   :  { %v2783_v50 = vadd.f32 1.0, %v4377_v57 }
0x1b6c   :  { %4380 = vrcp.f32 %v2783_v50 }
0x1b6f   :  { %v4379_v19 = vpop.eup %4378 }
0x1b70   :  { %v2946_v25 = vsub.f32 1.0, %v4379_v19  ;;  %v2944_v37 = vmul.f32 %v4379_v19, %v5164_v1 }
0x1b76   :  { %v4381_v24 = vpop.eup %4380 }
0x1b77   :  { %v2945_v31 = vsub.f32 1.0, %v4381_v24  ;;  %v2943_v43 = vmul.f32 %v4381_v24, %v5166_v51 }
0x1c1d   :  { %v3602_v22 = vpop.f32.mrb[36].mxu1 }
0x1c1e   :  { %v2857_v27 = vpop.f32.mrb[37].mxu1 }
0x1c1f   :  { %3635 = vmatprep.mubr.f32.mxu1 %v2857_v27 }
0x1c20   :  { %3636 = vmatmul.mubr.f32.vlgmr.msra.gmra.mrb[38].mxu1 %v3602_v22 }
0x1cf3   :  { %v3637_v55 = vpop.f32.mrb[38].mxu1 }
0x1cf4   :  { %v2938_v10 = vadd.f32 %v3637_v55, %v2612_v59  ;;  %v2932_v15 = vpop.f32.mrb[39].mxu1 }
0x1cf5   :  { %v2933_v18 = vadd.f32 %v2932_v15, %v2611_v6 }
0x1cf6   :  { %4382 = vtanh.f32 %v2938_v10 }
0x1cf7   :  { %4384 = vtanh.f32 %v2933_v18 }
0x1d00   :  { %v4383_v30 = vpop.eup %4382 }
0x1d01   :  { %v4385_v36 = vpop.eup %4384  ;;  %v2948_v42 = vmul.f32 %v4383_v30, %v2946_v25 }
0x1d02   :  { %v2947_v48 = vmul.f32 %v4385_v36, %v2945_v31 }
0x1d03   :  { %v2950_v49 = vadd.f32 %v2948_v42, %v2944_v37 }
0x1d04   :  { %v2949_v52 = vadd.f32 %v2947_v48, %v2943_v43 }
0x1d05   :  { %2953 = vst [vmem:[#allocation13 + $0x78] sm:$0xff] %v2950_v49 }
0x1d06   :  { %2952 = vst [vmem:[#allocation13 + $0x70] sm:$0xff] %v2949_v52 }
0x1d07   :  { %4531 = shalt.err (!%p4528_p10)
}
0x1d08   :  { %s4532_s26 = scalar_lea.hbm %s5220_s6, 2048 }
0x1d09   :  { %p4533_p11 = scmp.ne.s32.totalorder %s5220_s6, %s4532_s26  ;;  %p4536_p12 = scmp.lt.u32.totalorder %s4532_s26, %s5220_s6 }
0x1d0b   :  { %p4538_p13 = pnand %p4536_p12, %p4533_p11 }
0x1d0d   :  { %4541 = shalt.err (!%p4538_p13)
}
0x1d0e   :  { %2965 = dma.vmem_to_hbm [thread:$0]  %s2960_s8, 2048, %s5220_s6, [#allocation4], %s4557_s22, %s4557_s22, %s4558_s23  }
0x1d0f   :  { %4550 = dma.done.wait [#allocation4], 2048  }
0x1d10   :  { %4551 = vsyncadd [#allocation4], 4294965248 }
0x1d11   :  { %2969 = vsyncpa [#allocation3], 1 }
0x1d12   :  { %2970 = vsyncpa [#allocation6], 1 }
0x1d13   :  { %2971 = vsyncpa [#allocation9], 1 }
0x1d14   :  { %2972 = vsyncpa [#allocation12], 1 }
0x1d15   :  { %2973 = vsyncpa [#allocation4], 1 }

</bundles_post_ra>
